<compile_context>
chip_gen: v6e
topology: v6e:2x2x1
jax: 0.10.0
libtpu: 0.0.40
codegen_flags: <defaults>
</compile_context>

<pallas_src>
import jax
import jax.numpy as jnp
from jax.experimental import pallas as pl
from jax.experimental.pallas import tpu as pltpu


def _pos_enc_kernel(x_ref, m_ref, o_ref):
    """x_ref: (TM, R+1) packed positions + trailing ones column.
    m_ref: (R+1, LANES) lane-scatter of W (rows 0..R-1) with b in the last row.
    o_ref: (TM, LANES); lane l <-> (position offset l // E, embedding l % E)."""
    phase = jax.lax.dot_general(
        x_ref[...], m_ref[...],
        dimension_numbers=(((1,), (0,)), ((), ())),
        preferred_element_type=jnp.float32,
        precision=jax.lax.Precision.HIGHEST,  # f32-accurate passes: positions stay exact
    )
    o_ref[...] = jnp.sin(phase).astype(o_ref.dtype)  # only sin + store on VPU/EUP


def _row_axis_semantics():
    """Split the row grid across v7x's two TensorCores; plain 'parallel' elsewhere."""
    try:
        kind = jax.devices()[0].device_kind.lower()
    except Exception:
        kind = ""
    if "v7" in kind:
        return (getattr(pltpu, "CORE_PARALLEL", "parallel"),)
    return ("parallel",)


def _pos_enc_pallas(x_flat, w_e, b_e, *, rep, lanes, block_rows, out_dtype):
    p = x_flat.shape[0]
    e = w_e.shape[0]
    pr = p // rep
    kdim = rep + 1

    # Packed x with a trailing ones column: (P//R, R+1).
    x1 = jnp.concatenate(
        [x_flat.reshape(pr, rep), jnp.ones((pr, 1), jnp.float32)], axis=1)

    # M[j, l] = W[l % E] * (l // E == j)  for j < R;  M[R, l] = b[l % E].
    grp = jnp.arange(lanes, dtype=jnp.int32) // e
    w_t = jnp.tile(w_e, lanes // e)
    b_t = jnp.tile(b_e, lanes // e)
    m_w = jnp.where(grp[None, :] == jnp.arange(rep, dtype=jnp.int32)[:, None],
                    w_t[None, :], jnp.float32(0.0))
    m = jnp.concatenate([m_w, b_t[None, :]], axis=0).astype(jnp.float32)

    tm = min(block_rows, pr)
    if tm < pr:
        tm = max(8, (tm // 8) * 8)  # (8, 128) tiling constraint when not full-extent
    grid = (pl.cdiv(pr, tm),)

    out_itemsize = jnp.dtype(out_dtype).itemsize
    # Double-buffered x + out tiles, plus the VMEM-resident M, plus margin.
    vmem_bytes = 2 * tm * (lanes * out_itemsize + kdim * 4) + kdim * lanes * 4
    vmem_limit = int(max(vmem_bytes + (4 << 20), 32 << 20))

    cost = pl.CostEstimate(
        flops=2 * pr * kdim * lanes,
        transcendentals=p * e,
        bytes_accessed=p * e * out_itemsize + 4 * (pr * kdim + kdim * lanes),
    )

    return pl.pallas_call(
        _pos_enc_kernel,
        out_shape=jax.ShapeDtypeStruct((pr, lanes), out_dtype),
        grid_spec=pltpu.PrefetchScalarGridSpec(
            num_scalar_prefetch=0,
            grid=grid,
            in_specs=[
                pl.BlockSpec((tm, kdim), lambda i: (i, 0)),      # packed x (+ ones)
                pl.BlockSpec((kdim, lanes), lambda i: (0, 0)),   # M (VMEM resident)
            ],
            out_specs=pl.BlockSpec((tm, lanes), lambda i: (i, 0)),
        ),
        compiler_params=pltpu.CompilerParams(
            dimension_semantics=_row_axis_semantics(),
            vmem_limit_bytes=vmem_limit),
        cost_estimate=cost,
    )(x1, m)


def _choose_packing(e, p, max_lanes):
    """Widest lane-dense packing: lanes multiple of 128 and of E, R = lanes//E divides P."""
    for lanes in (512, 256, 128):
        if lanes <= max_lanes and lanes % e == 0 and p % (lanes // e) == 0:
            return lanes // e, lanes
    if e % 128 == 0:
        return 1, e
    return None, None


def positional_encoding(x_ns, weight_e, bias_e, *, block_rows=4096,
                        out_dtype=jnp.float32, max_lanes=512,
                        min_pallas_elems=16384):
    """out[n, s, e] = sin(x[n, s] * W[e] + b[e]); x_ns: (N, S) -> (N, S, E).

    out_dtype=jnp.bfloat16 halves HBM writeback when the kernel is mem-bound
    (v5e/v6e) and the consumer tolerates it; f32 default matches PyTorch.
    """
    n, s = x_ns.shape
    e = weight_e.shape[0]
    p = n * s
    x_f32 = x_ns.astype(jnp.float32)
    w_f32 = weight_e.astype(jnp.float32)
    b_f32 = bias_e.astype(jnp.float32)

    rep, lanes = _choose_packing(e, p, max_lanes)
    if rep is None or p * e < min_pallas_elems:
        # Tiny or awkward shapes: pallas_call fixed overhead dwarfs the work /
        # lane packing does not apply; plain XLA fusion is faster and exact.
        return jnp.sin(x_f32[:, :, None] * w_f32[None, None, :]
                       + b_f32[None, None, :]).astype(out_dtype)

    out_packed = _pos_enc_pallas(x_f32.reshape(p), w_f32, b_f32,
                                 rep=rep, lanes=lanes, block_rows=block_rows,
                                 out_dtype=out_dtype)
    # (P // R, R * E) is exactly the row-major memory of (N, S, E): free reshape.
    return out_packed.reshape(n, s, e)


if __name__ == "__main__":
    key = jax.random.PRNGKey(0)
    k_w, k_b, k_x = jax.random.split(key, 3)

    # Small shapes, but large enough to exercise the packed multi-block grid,
    # the partial-last-block path, and both lane widths.
    N, S, E = 4, 96, 32                      # P = 384 positions

    # Deterministic init mimicking nn.Linear(1, E): fan_in=1 -> uniform(-1, 1).
    weight = jax.random.uniform(k_w, (E,), jnp.float32, -1.0, 1.0)  # W[:, 0]
    bias = jax.random.uniform(k_b, (E,), jnp.float32, -1.0, 1.0)

    # Positions as floats (N, S): 0.0, 1.0, ... plus batch-dependent jitter.
    x = jnp.tile(jnp.arange(S, dtype=jnp.float32)[None, :], (N, 1))
    x = x + jax.random.uniform(k_x, (N, 1), jnp.float32, 0.0, 0.5)

    # Reference in plain JAX.
    ref = jnp.sin(x[:, :, None] * weight[None, None, :] + bias[None, None, :])

    # 1) Wide 512-lane packing (rep=16 -> pr=24), block_rows=16 -> 2 grid steps
    #    with a PARTIAL last block (exercises OOB-block padding/masking).
    out = positional_encoding(x, weight, bias, block_rows=16, min_pallas_elems=0)
    out = jax.block_until_ready(out)
    assert out.shape == (N, S, E)
    err = float(jnp.max(jnp.abs(out - ref)))
    assert jnp.allclose(out, ref, atol=1e-4, rtol=1e-4), f"max abs err {err}"

    # 2) Evenly dividing grid (3 blocks of 8 rows).
    out2 = positional_encoding(x, weight, bias, block_rows=8, min_pallas_elems=0)
    out2 = jax.block_until_ready(out2)
    assert jnp.allclose(out2, ref, atol=1e-4, rtol=1e-4)

    # 3) Narrow 128-lane packing path (rep=4 -> pr=96), multi-block.
    out3 = positional_encoding(x, weight, bias, block_rows=32, max_lanes=128,
                               min_pallas_elems=0)
    out3 = jax.block_until_ready(out3)
    assert jnp.allclose(out3, ref, atol=1e-4, rtol=1e-4)

    # 4) Small-shape XLA fallback dispatch.
    out_small = positional_encoding(x[:, :8], weight, bias)
    assert jnp.allclose(out_small, ref[:, :8], atol=1e-5, rtol=1e-5)

    print("KERNEL_OK")
</pallas_src>

<mosaic_0001>
module attributes {stable_mosaic.version = 11 : i64} {
  func.func @_pos_enc_kernel(%arg0: i32, %arg1: memref<16x17xf32, #tpu.memory_space<vmem>>, %arg2: memref<17x512xf32, #tpu.memory_space<vmem>>, %arg3: memref<16x512xf32, #tpu.memory_space<vmem>>) attributes {dimension_semantics = [#tpu.dimension_semantics<parallel>], iteration_bounds = array<i64: 2>, scalar_prefetch = 0 : i64, scratch_operands = 0 : i64, tpu.core_type = #tpu.core_type<tc>, window_params = [{transform_indices = @transform_0, window_bounds = array<i64: 16, 17>}, {pipeline_mode = #tpu.pipeline_mode<synchronous>, transform_indices = @transform_1, window_bounds = array<i64: 17, 512>}, {transform_indices = @transform_2, window_bounds = array<i64: 16, 512>}]} {
    %c0 = arith.constant 0 : index
    %c0_0 = arith.constant 0 : index
    %0 = vector.load %arg1[%c0, %c0_0] : memref<16x17xf32, #tpu.memory_space<vmem>>, vector<16x17xf32>
    %c0_1 = arith.constant 0 : index
    %c0_2 = arith.constant 0 : index
    %1 = vector.load %arg2[%c0_1, %c0_2] : memref<17x512xf32, #tpu.memory_space<vmem>>, vector<17x512xf32>
    %cst = arith.constant dense<0.000000e+00> : vector<16x512xf32>
    %2 = tpu.matmul %0, %1, %cst {dimension_numbers = #tpu.dot_dimension_numbers<[1], [0], [0], [1], [0, 0, 1, 1], [], []>, precision = #tpu.contract_precision<fp32>} : vector<16x17xf32>, vector<17x512xf32>, vector<16x512xf32> -> vector<16x512xf32>
    %3 = math.sin %2 : vector<16x512xf32>
    %c0_3 = arith.constant 0 : index
    %c0_4 = arith.constant 0 : index
    %4 = vector.load %arg3[%c0_3, %c0_4] : memref<16x512xf32, #tpu.memory_space<vmem>>, vector<16x512xf32>
    tpu.vector_store %arg3[%c0_3, %c0_4], %3 {strides = array<i32>} : memref<16x512xf32, #tpu.memory_space<vmem>>, vector<16x512xf32>,
    return
  }
  func.func @transform_0(%arg0: i32) -> (i32, i32) {
    %c0_i32 = arith.constant 0 : i32
    %c0_i32_0 = arith.constant 0 : i32
    return %arg0, %c0_i32 : i32, i32
  }
  func.func @transform_1(%arg0: i32) -> (i32, i32) {
    %c0_i32 = arith.constant 0 : i32
    %c0_i32_0 = arith.constant 0 : i32
    %c0_i32_1 = arith.constant 0 : i32
    return %c0_i32, %c0_i32_0 : i32, i32
  }
  func.func @transform_2(%arg0: i32) -> (i32, i32) {
    %c0_i32 = arith.constant 0 : i32
    %c0_i32_0 = arith.constant 0 : i32
    return %arg0, %c0_i32 : i32, i32
  }
}

</mosaic_0001>

<bundles_post_ra>
// kernel: tpu_custom_call.1
= control target key start
LH: loop header
LB: loop body
LE: loop exit
PB: predicated region body
PF: predicated region fallthrough
CT: control target
= control target key end

     0   :  { %7 = vsyncpa [#allocation3], 0  ;;  %s3722_s0 = inlined_call_operand.hbm [shape: f32[24,17], index: 0, kind: input, shape index: {}]   ;;  %s3723_s1 = inlined_call_operand.hbm [shape: f32[17,512], index: 1, kind: input, shape index: {}]   ;;  %s3724_s2 = inlined_call_operand.hbm [shape: f32[24,512], index: 2, kind: output, shape index: {}]  }
   0x1   :  { %9 = vsyncpa [#allocation3 + $0x1], 0 }
   0x2   :  { %10 = vsyncpa [#allocation6], 0 }
   0x3   :  { %11 = vsyncpa [#allocation4], 0 }
   0x4   :  { %13 = vsyncpa [#allocation4 + $0x1], 0  ;;  %s2647_s9 = smov 0   ;;  %s2649_s10 = smov 0  }
   0x5   :  { %s2651_s11 = smov 0   ;;  %s2653_s12 = smov 0  }
   0x6 LB: > { %s2668_s13 = sadd.s32 4294967295, %s2614_s12   ;;  %s2305_s14 = sadd.s32 4294967294, %s2614_s12   ;;  %s2614_s12 = sphi %s2653_s12, %s3751_s12   ;;  %s2610_s11 = sphi %s2651_s11, %s3750_s11   ;;  %s2606_s10 = sphi %s2649_s10, %s3749_s10   ;;  %s2602_s9 = sphi %s2647_s9, %s3748_s9  }
   0x7   : > { %s2672_s15 = sadd.s32 1, %s2614_s12   ;;  %s26_s16 = sadd.s32 1, %s2610_s11 }
   0x8   : > { %s23_s17 = ssub.s32 %s2614_s12, %s2672_s15  ;;  %p33_p0 = scmp.ne.s32.totalorder %s2610_s11, %s2606_s10 }
   0x9   : > { %p24_p1 = scmp.eq.s32.totalorder %s23_s17, 0  ;;  %p34_p2 = scmp.eq.s32.totalorder %s2614_s12, 0 }
   0xa   : > { %p39_p3 = scmp.ne.s32.totalorder %s2606_s10, %s2602_s9  ;;  %p40_p4 = scmp.eq.s32.totalorder %s2668_s13, 0 }
   0xb   : > { %s2684_s18 = scalar_select %p24_p1, %s2610_s11, %s26_s16  }
   0xc   : > { %p2686_p5 = por %p34_p2, %p33_p0  ;;  %p2692_p6 = por %p40_p4, %p39_p3 }
   0xd   : > { %p84_p7 = scmp.eq.s32.totalorder %s2668_s13, 1  ;;  %p90_p8 = scmp.eq.s32.totalorder %s2305_s14, 1 }
   0xe   : > { %s3728_s20 = scalar_select %p2692_p6, 1, 0 }
   0xf   : > { %p2306_p9 = scmp.ge.s32.totalorder %s2614_s12, 1  ;;  %p97_p10 = scmp.lt.s32.totalorder %s2614_s12, 3 }
  0x10   : > { %p2699_p11 = por %p84_p7, %p33_p0  ;;  %p2703_p12 = por %p90_p8, %p39_p3 }
  0x11   : > { %p2707_p13 = pnand %p2306_p9, %p97_p10  ;;  %s2616_s24 = smov [#allocation5]  }
  0x12   : > { %s3729_s21 = scalar_select %p2699_p11, 1, 0 }
  0x13   : > { %s3730_s22 = scalar_select %p2703_p12, 1, 0 }
  0x14   : > { %p2405_p1 = pneg %p2707_p13  ;;  %s109_s25 = sshll.u32 %s2616_s24, 4  ;;  %s110_s25 = int_to_ptr.vmem [resolvable:$true] %s109_s25 }
  0x15   : > { %s2505_s26 = scalar_lea.vmem %s110_s25, 1536  ;;  %p2513_p8 = scmp.lt.s32.totalorder %s110_s25, %s110_s25 }
  0x16   : > { %p2406_p2 = pnand %p2405_p1, %p40_p4  ;;  %p2506_p7 = scmp.ne.s32.totalorder %s110_s25, %s2505_s26 }
  0x17   : > { %p2514_p6 = scmp.lt.s32.totalorder %s2505_s26, %s2505_s26 }
  0x18   : > { %p2496_p0 = pneg %p2406_p2 }
  0x19   : > { %p2515_p12 = por %p2514_p6, %p2513_p8 }
  0x1a   : > { %p2508_p11 = pnand %p2506_p7, %p2496_p0 }
  0x1c   : > { %p2509_p3 = pneg %p2508_p11 }
  0x1e   : > { %p2516_p9 = pnand %p2515_p12, %p2509_p3 }
  0x20   : > { %2519 = shalt.err (!%p2516_p9)
}
  0x21   : > { %s2617_s27 = smov 512   ;;  %s2618_s28 = smov 32  }
  0x22   : > { %2408 = dma.hbm_to_vmem [thread:$0]  (!%p2406_p2), %s3723_s1, 1536, %s110_s25, [#allocation6], %s2617_s27, %s2617_s27, %s2618_s28  }
  0x23   : > { %p3726_p10 = scmp.ge.s32.totalorder %s2614_s12, 2 }
  0x25   : > { %119 = sbr.rel (%p3726_p10) target bundleno = 74 (0x4a), region = 20 }
  0x2a   : > { %122 = sbr.rel (!%p2686_p5) target bundleno = 74 (0x4a), region = 24  ;;  %s123_s3 = sand.u32 (%p2686_p5), 1, %s2610_s11  }
  0x2b   : > { %s2310_s4 = sshll.u32 (%p2686_p5), %s2614_s12, 1  ;;  %s2309_s5 = sshll.u32 (%p2686_p5), %s123_s3, 4 }
  0x2c   : > { %s129_s6 = ssub.s32 (%p2686_p5), 3, %s2310_s4  ;;  %s2728_s14 = scalar_lea.sflag (%p2686_p5), [#allocation3], %s123_s3 }
  0x2d   : > { %p130_p6 = scmp.lt.s32.totalorder (%p2686_p5), %s129_s6, 2  ;;  %s127_s16 = scalar_lea.vmem (%p2686_p5), [#allocation2], %s2309_s5 }
  0x2f   : > { %s3753_s6 = smov (!%p130_p6, %s129_s6), 2 }
  0x30   : > { %s2725_s7 = sshll.u32 %s3753_s6, 7 }
  0x31   : > { %s134_s8 = ssub.s32 256, %s2725_s7 }
  0x32   : > { %135 = vsyncadd %s2728_s14, %s134_s8  ;;  %p2312_p5 = scmp.ne.s32.totalorder %s2725_s7, 0  ;;  %s2363_s17 = sshll.u32 %s2614_s12, 8 }
  0x33   : > { %s2736_s25 = scalar_lea.hbm %s3722_s0, %s2363_s17  ;;  %s140_s26 = sshll.u32 %s127_s16, 4  ;;  %s2738_s26 = int_to_ptr.vmem [resolvable:$true] %s140_s26 }
  0x34   : > { %s2520_s27 = scalar_lea.hbm %s2736_s25, %s2725_s7  ;;  %s2524_s30 = scalar_lea.hbm %s3722_s0, 384 }
  0x35   : > { %p2521_p11 = scmp.ne.s32.totalorder %s2736_s25, %s2520_s27  ;;  %p2525_p2 = scmp.lt.s32.totalorder %s2736_s25, %s3722_s0 }
  0x36   : > { %p2526_p0 = scmp.lt.s32.totalorder %s2524_s30, %s2520_s27 }
  0x37   : > { %p2522_p12 = pnand %p2521_p11, %p2312_p5 }
  0x38   : > { %p2527_p7 = por %p2526_p0, %p2525_p2 }
  0x39   : > { %p2523_p1 = pneg %p2522_p12 }
  0x3b   : > { %p2528_p3 = pnand %p2527_p7, %p2523_p1 }
  0x3d   : > { %2531 = shalt.err (!%p2528_p3)
}
  0x3e   : > { %s2532_s5 = scalar_lea.vmem %s2738_s26, %s2725_s7  ;;  %s2619_s6 = smov [#allocation2]  }
  0x3f   : > { %p2533_p8 = scmp.ne.s32.totalorder %s2738_s26, %s2532_s5  ;;  %s2536_s8 = sshll.u32 %s2619_s6, 4  ;;  %s2537_s8 = int_to_ptr.vmem [resolvable:$false] %s2536_s8 }
  0x40   : > { %s2538_s16 = scalar_lea.vmem %s2537_s8, 512  ;;  %p2539_p11 = scmp.lt.s32.totalorder %s2738_s26, %s2537_s8 }
  0x41   : > { %p2534_p9 = pnand %p2533_p8, %p2312_p5  ;;  %p2540_p12 = scmp.lt.s32.totalorder %s2538_s16, %s2532_s5 }
  0x43   : > { %p2535_p6 = pneg %p2534_p9  ;;  %p2541_p10 = por %p2540_p12, %p2539_p11 }
  0x45   : > { %p2542_p2 = pnand %p2541_p10, %p2535_p6 }
  0x47   : > { %2545 = shalt.err (!%p2542_p2)
}
  0x48   : > { %s2620_s17 = smov 128   ;;  %s2621_s19 = smov 8  }
  0x49   : > { %146 = dma.hbm_to_vmem [thread:$0]  (%p2312_p5), %s2736_s25, %s2725_s7, %s2738_s26, %s2728_s14, %s2620_s17, %s2620_s17, %s2621_s19  }
  0x4a PF: > { %152 = sbr.rel (%p2707_p13) target bundleno = 587 (0x24b), region = 28  ;;  %s2767_s24 = sand.u32 (!%p2707_p13), 1, %s2606_s10  }
  0x4b   : > { %s2317_s27 = sshll.u32 (!%p2707_p13), %s2767_s24, 4  ;;  %s155_s28 = scalar_lea.sflag (!%p2707_p13), [#allocation3], %s2767_s24 }
  0x4c   : > { %s158_s29 = scalar_lea.vmem (!%p2707_p13), [#allocation2], %s2317_s27  ;;  %p3732_p10 = scmp.ne.s32.totalorder (!%p2707_p13), %s3728_s20, 0 }
  0x4f   : > { %2589 = dma.done.wait (%p3732_p10), %s155_s28, 256  }
  0x50   : > { %2591 = vsyncadd (%p3732_p10), %s155_s28, 4294967040 }
  0x51   : > { %2593 = dma.done.wait (%p40_p4), [#allocation6], 1536  }
  0x52   : > { %2595 = vsyncadd (%p40_p4), [#allocation6], 4294965760  ;;  %v2622_v0 = vmov 0.0   ;;  %vm215_vm0 = vcmask 1040384   ;;  %v205_v1 = vld [vmem:[#allocation5 + $0x48] sm:$0x1] }
  0x53   : > { %298 = vmatprep.mubr.f32.mxu0 %v2622_v0  ;;  %415 = vmatprep.mubr.f32.mxu1 %v2622_v0  ;;  %v204_v2 = vld [vmem:[#allocation5 + $0x40] sm:$0x1]  ;;  %v201_v3 = vld [vmem:[#allocation5 + $0x28] sm:$0xff]  ;;  %vm208_vm1 = vcmask 138240   ;;  %v220_v4 = vsel %vm215_vm0, %v205_v1, 0  ;;  %v203_v58 = vld [vmem:[#allocation5 + $0x38] sm:$0xff] }
  0x54   : > { %v217_v5 = vsel %vm215_vm0, %v204_v2, 0  ;;  %v2783_v6 = vand.u32 4294901760, %v201_v3  ;;  %v200_v7 = vld [vmem:[#allocation5 + $0x20] sm:$0xff]  ;;  %v197_v8 = vld [vmem:[#allocation5 + $0x8] sm:$0xff]  ;;  %v2785_v10 = vand.u32 4294901760, %v220_v4  ;;  %v202_v60 = vld [vmem:[#allocation5 + $0x30] sm:$0xff] }
  0x55   : > { %v196_v9 = vld [vmem:[#allocation5] sm:$0xff]  ;;  %v2787_v11 = vand.u32 4294901760, %v217_v5  ;;  %v2789_v12 = vand.u32 4294901760, %v200_v7  ;;  %v2791_v13 = vand.u32 4294901760, %v197_v8  ;;  %v195_v15 = vld [vmem:[%s158_s29 + $0x8] sm:$0xff]  ;;  %v2890_v61 = vand.u32 4294901760, %v203_v58 }
  0x56   : > { %v194_v14 = vld [vmem:[%s158_s29] sm:$0xff]  ;;  %v2793_v16 = vand.u32 4294901760, %v196_v9  ;;  %v2797_v18 = vsub.f32 %v201_v3, %v2783_v6  ;;  %v213_v19 = vsel %vm208_vm1, %v195_v15, 0  ;;  %255 = vmatprep.subr.mxu0 %v2785_v10  ;;  %v2804_v21 = vsub.f32 %v220_v4, %v2785_v10  ;;  %v207_v53 = vld [vmem:[#allocation5 + $0x58] sm:$0x1]  ;;  %s2319_s20 = sshll.u32 %s2767_s24, 6 }
  0x57   : > { %v210_v17 = vsel %vm208_vm1, %v194_v14, 0  ;;  %v2807_v22 = vsub.f32 %v217_v5, %v2787_v11  ;;  %v2810_v23 = vsub.f32 %v200_v7, %v2789_v12  ;;  %257 = vmatpush1.msra.mxu0 %v2787_v11  ;;  %v2814_v25 = vand.u32 4294901760, %v213_v19  ;;  %v206_v54 = vld [vmem:[#allocation5 + $0x50] sm:$0x1]  ;;  %v199_v62 = vld [vmem:[#allocation5 + $0x18] sm:$0xff]  ;;  %s3315_s23 = scalar_lea.vmem [#allocation7], %s2319_s20 }
  0x58   : > { %v2801_v20 = vand.u32 4294901760, %v210_v17  ;;  %v361_v24 = vand.u32 4294901760, %v2797_v18  ;;  %v2817_v26 = vsub.f32 %v197_v8, %v2791_v13  ;;  %v2820_v27 = vsub.f32 %v196_v9, %v2793_v16  ;;  %259 = vmatprep.subr.mxu0 %v2783_v6  ;;  %v198_v2 = vld [vmem:[#allocation5 + $0x10] sm:$0xff]  ;;  %s2201_s7 = scalar_lea.sflag [#allocation4], %s2767_s24  ;;  %p3745_p4 = scmp.ne.s32.totalorder %s3729_s21, 0 }
  0x59   : > { %v349_v29 = vand.u32 4294901760, %v2804_v21  ;;  %v355_v30 = vand.u32 4294901760, %v2807_v22  ;;  %v367_v31 = vand.u32 4294901760, %v2810_v23  ;;  %261 = vmatpush1.msra.mxu0 %v2789_v12  ;;  %v2834_v33 = vsub.f32 %v213_v19, %v2814_v25  ;;  %s2353_s14 = sshll.u32 (%p3745_p4), %s2668_s13, 1 }
  0x5a   : > { %v2824_v28 = vsub.f32 %v210_v17, %v2801_v20  ;;  %v362_v32 = vsub.f32 %v2797_v18, %v361_v24  ;;  %v373_v34 = vand.u32 4294901760, %v2817_v26  ;;  %v379_v35 = vand.u32 4294901760, %v2820_v27  ;;  %263 = vmatprep.subr.mxu0 %v2791_v13  ;;  %s2209_s25 = ssub.s32 (%p3745_p4), 3, %s2353_s14 }
  0x5b   : > { %v350_v37 = vsub.f32 %v2804_v21, %v349_v29  ;;  %v356_v38 = vsub.f32 %v2807_v22, %v355_v30  ;;  %v368_v39 = vsub.f32 %v2810_v23, %v367_v31  ;;  %265 = vmatpush1.msra.mxu0 %v2793_v16  ;;  %v2851_v40 = vand.u32 4294901760, %v2834_v33  ;;  %p2210_p13 = scmp.lt.s32.totalorder (%p3745_p4), %s2209_s25, 2 }
  0x5c   : > { %v2840_v36 = vand.u32 4294901760, %v2824_v28  ;;  %v374_v41 = vsub.f32 %v2817_v26, %v373_v34  ;;  %v380_v42 = vsub.f32 %v2820_v27, %v379_v35  ;;  %v363_v46 = vand.u32 4294901760, %v362_v32  ;;  %458 = vmatprep.subr.mxu0 %v2804_v21 }
  0x5d   : > { %v351_v44 = vand.u32 4294901760, %v350_v37  ;;  %v357_v45 = vand.u32 4294901760, %v356_v38  ;;  %v369_v47 = vand.u32 4294901760, %v368_v39  ;;  %v313_v48 = vsub.f32 %v2834_v33, %v2851_v40 }
  0x5e   : > { %v302_v43 = vsub.f32 %v2824_v28, %v2840_v36  ;;  %v375_v50 = vand.u32 4294901760, %v374_v41  ;;  %v381_v51 = vand.u32 4294901760, %v380_v42  ;;  %v226_v55 = vsel %vm215_vm0, %v207_v53, 0 }
  0x5f   : > { %352 = vmatprep.subr.mxu1 %v351_v44  ;;  %v2867_v52 = vand.u32 4294901760, %v313_v48  ;;  %v223_v56 = vsel %vm215_vm0, %v206_v54, 0  ;;  %v2880_v57 = vand.u32 4294901760, %v226_v55  ;;  %v2893_v63 = vand.u32 4294901760, %v202_v60 }
  0x60   : > { %v2864_v49 = vand.u32 4294901760, %v302_v43  ;;  %358 = vmatpush1.msra.mxu1 %v357_v45  ;;  %v2884_v59 = vand.u32 4294901760, %v223_v56  ;;  %v2906_v4 = vand.u32 4294901760, %v199_v62  ;;  %v2911_v5 = vand.u32 4294901760, %v198_v2 }
  0x61   : > { %364 = vmatprep.subr.mxu1 %v363_v46  ;;  %v2896_v1 = vsub.f32 %v226_v55, %v2880_v57  ;;  %v2914_v7 = vsub.f32 %v203_v58, %v2890_v61  ;;  %v2920_v8 = vsub.f32 %v202_v60, %v2893_v63 }
  0x62   : > { %304 = vmatmul.mubr.f32.vlgmr.msra.gmra.mxu0 %v2864_v49  ;;  %370 = vmatpush1.msra.mxu1 %v369_v47  ;;  %v2902_v3 = vsub.f32 %v223_v56, %v2884_v59  ;;  %v2931_v15 = vsub.f32 %v199_v62, %v2906_v4  ;;  %v2936_v17 = vsub.f32 %v198_v2, %v2911_v5 }
  0x63   : > { %309 = vmatprep.mubr.f32.mxu0 %v2622_v0  ;;  %461 = vmatpush1.msra.mxu0 %v2807_v22  ;;  %v915_v9 = vand.u32 4294901760, %v2896_v1  ;;  %v933_v19 = vand.u32 4294901760, %v2920_v8 }
  0x64   : > { %376 = vmatprep.subr.mxu1 %v375_v50  ;;  %464 = vmatprep.subr.mxu0 %v2797_v18  ;;  %v921_v14 = vand.u32 4294901760, %v2902_v3  ;;  %v927_v18 = vand.u32 4294901760, %v2914_v7  ;;  %v939_v21 = vand.u32 4294901760, %v2931_v15  ;;  %v945_v22 = vand.u32 4294901760, %v2936_v17 }
  0x65   : > { %382 = vmatpush1.msra.mxu1 %v381_v51  ;;  %467 = vmatpush1.msra.mxu0 %v2810_v23 }
  0x66   : > { %315 = vmatmul.mubr.f32.gmra.mxu0 %v2867_v52  ;;  %417 = vmatmul.mubr.f32.vlgmr.msra.gmra.mxu1 %v2801_v20 }
  0x67   : > { %550 = vmatprep.subr.mxu1 %v2785_v10  ;;  %470 = vmatprep.subr.mxu0 %v2817_v26  ;;  %v940_v26 = vsub.f32 %v2931_v15, %v939_v21 }
  0x68   : > { %506 = vmatprep.mubr.f32.mxu0 %v2622_v0  ;;  %473 = vmatpush1.msra.mxu0 %v2820_v27  ;;  %v946_v27 = vsub.f32 %v2936_v17, %v945_v22 }
  0x69   : > { %552 = vmatpush1.msra.mxu1 %v2787_v11  ;;  %422 = vmatprep.mubr.f32.mxu1 %v2622_v0 }
  0x6a   : > { %509 = vmatmul.mubr.f32.vlgmr.msra.gmra.mxu0 %v2824_v28  ;;  %554 = vmatprep.subr.mxu1 %v2783_v6 }
  0x6b   : > { %424 = vmatmul.mubr.f32.gmra.mxu1 %v2814_v25  ;;  %641 = vmatprep.subr.mxu0 %v349_v29 }
  0x6c   : > { %556 = vmatpush1.msra.mxu1 %v2789_v12  ;;  %514 = vmatprep.mubr.f32.mxu0 %v2622_v0 }
  0x6d   : > { %645 = vmatpush1.msra.mxu0 %v355_v30  ;;  %558 = vmatprep.subr.mxu1 %v2791_v13  ;;  %v947_v30 = vand.u32 4294901760, %v946_v27 }
  0x6e   : > { %517 = vmatmul.mubr.f32.gmra.mxu0 %v2834_v33  ;;  %649 = vmatprep.subr.mxu0 %v361_v24 }
  0x6f   : > { %560 = vmatpush1.msra.mxu1 %v2793_v16  ;;  %593 = vmatprep.mubr.f32.mxu1 %v2622_v0 }
  0x70   : > { %653 = vmatpush1.msra.mxu0 %v367_v31  ;;  %597 = vmatmul.mubr.f32.vlgmr.msra.gmra.mxu1 %v2840_v36 }
  0x71   : > { %657 = vmatprep.subr.mxu0 %v373_v34  ;;  %736 = vmatprep.subr.mxu1 %v2785_v10  ;;  %v916_v10 = vsub.f32 %v2896_v1, %v915_v9 }
  0x72   : > { %661 = vmatpush1.msra.mxu0 %v379_v35  ;;  %694 = vmatprep.mubr.f32.mxu0 %v2622_v0 }
  0x73   : > { %738 = vmatpush1.msra.mxu1 %v2787_v11  ;;  %696 = vmatmul.mubr.f32.vlgmr.msra.gmra.mxu0 %v2801_v20  ;;  %v922_v11 = vsub.f32 %v2902_v3, %v921_v14  ;;  %v917_v23 = vand.u32 4294901760, %v916_v10 }
  0x74   : > { %602 = vmatprep.mubr.f32.mxu1 %v2622_v0  ;;  %740 = vmatprep.subr.mxu1 %v2783_v6  ;;  %v928_v6 = vsub.f32 %v2914_v7, %v927_v18 }
  0x75   : > { %606 = vmatmul.mubr.f32.gmra.mxu1 %v2851_v40  ;;  %821 = vmatprep.subr.mxu0 %v2880_v57  ;;  %v923_v24 = vand.u32 4294901760, %v922_v11 }
  0x76   : > { %742 = vmatpush1.msra.mxu1 %v2789_v12  ;;  %701 = vmatprep.mubr.f32.mxu0 %v2622_v0  ;;  %v934_v12 = vsub.f32 %v2920_v8, %v933_v19 }
  0x77   : > { %823 = vmatpush1.msra.mxu0 %v2884_v59  ;;  %744 = vmatprep.subr.mxu1 %v2791_v13  ;;  %v929_v13 = vand.u32 4294901760, %v928_v6 }
  0x78   : > { %703 = vmatmul.mubr.f32.gmra.mxu0 %v2814_v25  ;;  %825 = vmatprep.subr.mxu0 %v2890_v61  ;;  %v935_v29 = vand.u32 4294901760, %v934_v12 }
  0x79   : > { %746 = vmatpush1.msra.mxu1 %v2793_v16  ;;  %779 = vmatprep.mubr.f32.mxu1 %v2622_v0  ;;  %v941_v16 = vand.u32 4294901760, %v940_v26 }
  0x7a   : > { %827 = vmatpush1.msra.mxu0 %v2893_v63  ;;  %781 = vmatmul.mubr.f32.vlgmr.msra.gmra.mxu1 %v2801_v20 }
  0x7b   : > { %829 = vmatprep.subr.mxu0 %v2906_v4  ;;  %918 = vmatprep.subr.mxu1 %v917_v23 }
  0x7c   : > { %831 = vmatpush1.msra.mxu0 %v2911_v5  ;;  %864 = vmatprep.mubr.f32.mxu0 %v2622_v0 }
  0x7d   : > { %924 = vmatpush1.msra.mxu1 %v923_v24  ;;  %870 = vmatmul.mubr.f32.vlgmr.msra.gmra.mxu0 %v2864_v49 }
  0x7e   : > { %786 = vmatprep.mubr.f32.mxu1 %v2622_v0  ;;  %930 = vmatprep.subr.mxu1 %v929_v13 }
  0x7f   : > { %788 = vmatmul.mubr.f32.gmra.mxu1 %v2814_v25  ;;  %1024 = vmatprep.subr.mxu0 %v2896_v1 }
  0x80   : > { %936 = vmatpush1.msra.mxu1 %v935_v29  ;;  %875 = vmatprep.mubr.f32.mxu0 %v2622_v0 }
  0x81   : > { %1027 = vmatpush1.msra.mxu0 %v2902_v3  ;;  %942 = vmatprep.subr.mxu1 %v941_v16 }
  0x82   : > { %881 = vmatmul.mubr.f32.gmra.mxu0 %v2867_v52  ;;  %1030 = vmatprep.subr.mxu0 %v2914_v7 }
  0x83   : > { %948 = vmatpush1.msra.mxu1 %v947_v30  ;;  %981 = vmatprep.mubr.f32.mxu1 %v2622_v0 }
  0x84   : > { %1033 = vmatpush1.msra.mxu0 %v2920_v8  ;;  %983 = vmatmul.mubr.f32.vlgmr.msra.gmra.mxu1 %v2801_v20 }
  0x85   : > { %1036 = vmatprep.subr.mxu0 %v2931_v15  ;;  %1116 = vmatprep.subr.mxu1 %v2880_v57 }
  0x86   : > { %1039 = vmatpush1.msra.mxu0 %v2936_v17  ;;  %1072 = vmatprep.mubr.f32.mxu0 %v2622_v0 }
  0x87   : > { %1118 = vmatpush1.msra.mxu1 %v2884_v59  ;;  %1075 = vmatmul.mubr.f32.vlgmr.msra.gmra.mxu0 %v2824_v28 }
  0x88   : > { %988 = vmatprep.mubr.f32.mxu1 %v2622_v0  ;;  %1120 = vmatprep.subr.mxu1 %v2890_v61 }
  0x89   : > { %990 = vmatmul.mubr.f32.gmra.mxu1 %v2814_v25  ;;  %1207 = vmatprep.subr.mxu0 %v915_v9 }
  0x8a   : > { %1122 = vmatpush1.msra.mxu1 %v2893_v63  ;;  %1080 = vmatprep.mubr.f32.mxu0 %v2622_v0 }
  0x8b   : > { %1211 = vmatpush1.msra.mxu0 %v921_v14  ;;  %1124 = vmatprep.subr.mxu1 %v2906_v4 }
  0x8c   : > { %1083 = vmatmul.mubr.f32.gmra.mxu0 %v2834_v33  ;;  %1215 = vmatprep.subr.mxu0 %v927_v18 }
  0x8d   : > { %1126 = vmatpush1.msra.mxu1 %v2911_v5  ;;  %1159 = vmatprep.mubr.f32.mxu1 %v2622_v0 }
  0x8e   : > { %1219 = vmatpush1.msra.mxu0 %v933_v19  ;;  %1163 = vmatmul.mubr.f32.vlgmr.msra.gmra.mxu1 %v2840_v36 }
  0x8f   : > { %1223 = vmatprep.subr.mxu0 %v939_v21  ;;  %1302 = vmatprep.subr.mxu1 %v2880_v57 }
  0x90   : > { %1227 = vmatpush1.msra.mxu0 %v945_v22  ;;  %1260 = vmatprep.mubr.f32.mxu0 %v2622_v0 }
  0x91   : > { %1304 = vmatpush1.msra.mxu1 %v2884_v59  ;;  %1262 = vmatmul.mubr.f32.vlgmr.msra.gmra.mxu0 %v2801_v20 }
  0x92   : > { %1168 = vmatprep.mubr.f32.mxu1 %v2622_v0  ;;  %1306 = vmatprep.subr.mxu1 %v2890_v61 }
  0x93   : > { %1172 = vmatmul.mubr.f32.gmra.mxu1 %v2851_v40  ;;  %1267 = vmatprep.mubr.f32.mxu0 %v2622_v0 }
  0x94   : > { %1308 = vmatpush1.msra.mxu1 %v2893_v63  ;;  %1345 = vmatprep.mubr.f32.mxu1 %v2622_v0 }
  0x95   : > { %1310 = vmatprep.subr.mxu1 %v2906_v4  ;;  %1269 = vmatmul.mubr.f32.gmra.mxu0 %v2814_v25 }
  0x96   : > { %1312 = vmatpush1.msra.mxu1 %v2911_v5 }
  0x97   : > { %1347 = vmatmul.mubr.f32.vlgmr.msra.gmra.mxu1 %v2801_v20 }
  0x98   : > { %1352 = vmatprep.mubr.f32.mxu1 %v2622_v0 }
  0x9b   : > { %1354 = vmatmul.mubr.f32.gmra.mxu1 %v2814_v25 }
 0x122   : > { %v305_v28 = vpop.f32.mrf.mxu0 }
 0x124   : > { %v307_v31 = vpop.f32.mrf.mxu0 }
 0x126   : > { %v316_v32 = vpop.f32.mrf.mxu0  ;;  %v418_v33 = vpop.f32.mrf.mxu1 }
 0x127   : > { %v419_v41 = vadd.f32 %v418_v33, %v305_v28  ;;  %v2624_v33 = vmov 2475754826  }
 0x128   : > { %v318_v34 = vpop.f32.mrf.mxu0  ;;  %v420_v35 = vpop.f32.mrf.mxu1 }
 0x129   : > { %v421_v44 = vadd.f32 %v420_v35, %v307_v31  ;;  %v2623_v31 = vmov 683565275   ;;  %v2625_v35 = vmov 2131351028  }
 0x12a   : > { %v510_v36 = vpop.f32.mrf.mxu0 }
 0x12b   : > { %v425_v37 = vpop.f32.mrf.mxu1  ;;  %v511_v45 = vadd.f32 %v510_v36, %v419_v41 }
 0x12c   : > { %v512_v38 = vpop.f32.mrf.mxu0  ;;  %v426_v0 = vadd.f32 %v425_v37, %v316_v32  ;;  %v2626_v37 = vmov 2102212464  }
 0x12d   : > { %v427_v39 = vpop.f32.mrf.mxu1  ;;  %v513_v48 = vadd.f32 %v512_v38, %v421_v44 }
 0x12e   : > { %v518_v40 = vpop.f32.mrf.mxu0  ;;  %v428_v8 = vadd.f32 %v427_v39, %v318_v34  ;;  %v2627_v39 = vmov 920167782  }
 0x12f   : > { %v519_v51 = vadd.f32 %v518_v40, %v426_v0 }
 0x130   : > { %v520_v42 = vpop.f32.mrf.mxu0  ;;  %v598_v43 = vpop.f32.mrf.mxu1 }
 0x131   : > { %v599_v47 = vadd.f32 %v598_v43, %v511_v45  ;;  %v521_v22 = vadd.f32 %v520_v42, %v428_v8  ;;  %v2628_v45 = vmov 1326507024  }
 0x132   : > { %v600_v20 = vpop.f32.mrf.mxu1 }
 0x133   : > { %v697_v46 = vpop.f32.mrf.mxu0  ;;  %v601_v52 = vadd.f32 %v600_v20, %v513_v48 }
 0x134   : > { %v698_v53 = vadd.f32 %v697_v46, %v599_v47 }
 0x135   : > { %v607_v25 = vpop.f32.mrf.mxu1  ;;  %v699_v49 = vpop.f32.mrf.mxu0 }
 0x136   : > { %v608_v54 = vadd.f32 %v607_v25, %v519_v51  ;;  %v700_v58 = vadd.f32 %v699_v49, %v601_v52 }
 0x137   : > { %v609_v50 = vpop.f32.mrf.mxu1 }
 0x138   : > { %v704_v55 = vpop.f32.mrf.mxu0  ;;  %v3041_v24 = vadd.f32 %v609_v50, %v521_v22 }
 0x139   : > { %v705_v60 = vadd.f32 %v704_v55, %v608_v54 }
 0x13a   : > { %v782_v56 = vpop.f32.mrf.mxu1 }
 0x13b   : > { %v3025_v57 = vadd.f32 %v782_v56, %v698_v53 }
 0x13c   : > { %v784_v59 = vpop.f32.mrf.mxu1 }
 0x13d   : > { %v1360_v61 = vand.u32 2147483647, %v3025_v57  ;;  %v1363_v62 = vand.u32 2139095040, %v3025_v57  ;;  %v3029_v63 = vadd.f32 %v784_v59, %v700_v58  ;;  %vm1362_vm15 = vcmp.lt.s32.totalorder %v3025_v57, 0 }
 0x13f   : > { %v789_v1 = vpop.f32.mrf.mxu1  ;;  %v1364_v2 = vshrl.u32 %v1363_v62, 23  ;;  %v1367_v3 = vand.u32 8388607, %v1360_v61  ;;  %v1464_v5 = vand.u32 2147483647, %v3029_v63  ;;  %v1467_v7 = vand.u32 2139095040, %v3029_v63 }
 0x140   : > { %v3033_v4 = vadd.f32 %v789_v1, %v705_v60  ;;  %vm3154_vm1 = vcmp.le.f32.partialorder %v1360_v61, 0.7853982 }
 0x141   : > { %v2320_v9 = vadd.s32 4294967169, %v1364_v2  ;;  %v1468_v14 = vshrl.u32 %v1467_v7, 23  ;;  %v1471_v15 = vand.u32 8388607, %v1464_v5  ;;  %v1368_v18 = vor.u32 8388608, %v1367_v3 }
 0x142   : > { %v1779_v17 = vand.u32 2139095040, %v3033_v4  ;;  %v1776_v21 = vand.u32 2147483647, %v3033_v4 }
 0x143   : > { %v1370_v10 = vadd.s32 1, %v2320_v9  ;;  %v2324_v19 = vadd.s32 4294967169, %v1468_v14  ;;  %v1472_v11 = vor.u32 8388608, %v1471_v15  ;;  %v3043_v27 = vshll.u32 %v1368_v18, 8 }
 0x144   : > { %v1780_v6 = vshrl.u32 %v1779_v17, 23  ;;  %v3049_v30 = vand.u32 8388607, %v1776_v21 }
 0x145   : > { %vm1371_vm2 = vcmp.gt.s32.totalorder %v1370_v10, 0  ;;  %v1474_v12 = vadd.s32 1, %v2324_v19  ;;  %v3045_v29 = vshll.u32 %v1472_v11, 8 }
 0x146   : > { %v1372_v23 = vsel %vm1371_vm2, %v1370_v10, 0  ;;  %v2336_v16 = vadd.s32 4294967169, %v1780_v6 }
 0x147   : > { %v1373_v26 = vshrl.u32 %v1372_v23, 5  ;;  %v1374_v13 = vand.u32 31, %v1372_v23  ;;  %vm1475_vm3 = vcmp.gt.s32.totalorder %v1474_v12, 0 }
 0x148   : > { %v1476_v48 = vsel %vm1475_vm3, %v1474_v12, 0  ;;  %v1786_v3 = vadd.s32 1, %v2336_v16  ;;  %vm1466_vm3 = vcmp.lt.s32.totalorder %v3029_v63, 0 }
 0x149   : > { %v1375_v28 = vsub.s32 32, %v1374_v13  ;;  %v1377_v32 = vshll.u32 %v2623_v31, %v1374_v13  ;;  %v1380_v34 = vshll.u32 %v2624_v33, %v1374_v13  ;;  %v1383_v36 = vshll.u32 %v2625_v35, %v1374_v13 }
 0x14a   : > { %v1386_v38 = vshll.u32 %v2626_v37, %v1374_v13  ;;  %v1389_v40 = vshll.u32 %v2627_v39, %v1374_v13  ;;  %vm1392_vm4 = vcmp.lt.s32.totalorder %v1373_v26, 1  ;;  %vm1393_vm5 = vcmp.lt.s32.totalorder %v1373_v26, 2 }
 0x14b   : > { %v1378_v41 = vshrl.u32 %v2624_v33, %v1375_v28  ;;  %v1381_v42 = vshrl.u32 %v2625_v35, %v1375_v28  ;;  %v1384_v43 = vshrl.u32 %v2626_v37, %v1375_v28  ;;  %v1376_v44 = vshrl.u32 %v2623_v31, %v1375_v28 }
 0x14c   : > { %v1387_v20 = vshrl.u32 %v2627_v39, %v1375_v28  ;;  %v1390_v0 = vshrl.u32 %v2628_v45, %v1375_v28  ;;  %vm1394_vm6 = vcmp.lt.s32.totalorder %v1373_v26, 3  ;;  %vm1395_vm7 = vcmp.lt.s32.totalorder %v1373_v26, 4 }
 0x14d   : > { %v1379_v46 = vor.u32 %v1378_v41, %v1377_v32  ;;  %v1382_v25 = vor.u32 %v1381_v42, %v1380_v34  ;;  %v1385_v47 = vor.u32 %v1384_v43, %v1383_v36  ;;  %v1478_v51 = vand.u32 31, %v1476_v48 }
 0x14e   : > { %v1388_v49 = vor.u32 %v1387_v20, %v1386_v38  ;;  %v1391_v50 = vor.u32 %v1390_v0, %v1389_v40  ;;  %v1477_v9 = vshrl.u32 %v1476_v48, 5  ;;  %vm1787_vm13 = vcmp.gt.s32.totalorder %v1786_v3, 0 }
 0x14f   : > { %v1396_v52 = vsel %vm1392_vm4, %v1376_v44, %v1379_v46  ;;  %v1397_v53 = vsel %vm1395_vm7, %v1385_v47, 2102212464  ;;  %v1400_v54 = vsel %vm1392_vm4, %v1379_v46, %v1382_v25  ;;  %v1404_v55 = vsel %vm1392_vm4, %v1382_v25, %v1385_v47  ;;  %v706_v44 = vpop.f32.mrf.mxu0 }
 0x150   : > { %v1398_v56 = vsel %vm1394_vm6, %v1382_v25, %v1397_v53  ;;  %v1401_v58 = vsel %vm1395_vm7, %v1388_v49, 920167782  ;;  %v1405_v59 = vsel %vm1395_vm7, %v1391_v50, 1326507024  ;;  %v1479_v60 = vsub.s32 32, %v1478_v51 }
 0x151   : > { %v1399_v62 = vsel %vm1393_vm5, %v1396_v52, %v1398_v56  ;;  %v1402_v1 = vsel %vm1394_vm6, %v1385_v47, %v1401_v58  ;;  %v1406_v2 = vsel %vm1394_vm6, %v1388_v49, %v1405_v59  ;;  %v1481_v14 = vshll.u32 %v2623_v31, %v1478_v51 }
 0x152   : > { %v1403_v7 = vsel %vm1393_vm5, %v1400_v54, %v1402_v1  ;;  %v1407_v8 = vsel %vm1393_vm5, %v1404_v55, %v1406_v2  ;;  %v1415_v19 = vmul.u32 %v3043_v27, %v1399_v62  ;;  %v1482_v11 = vshrl.u32 %v2624_v33, %v1479_v60  ;;  %v3108_v62 = vpop.f32.mrf.mxu0  ;;  %v791_v2 = vpop.f32.mrf.mxu1 }
 0x153   : > { %v3074_v15 = vmul.u32.u64.low %v3043_v27, %v1407_v8  ;;  %v3075_v17 = vmul.u32.u64.high %v3043_v27, %v1407_v8, %v3074_v15  ;;  %v3078_v18 = vmul.u32.u64.low %v3043_v27, %v1403_v7  ;;  %v3079_v10 = vmul.u32.u64.high %v3043_v27, %v1403_v7, %v3078_v18 }
 0x154   : > { %v1484_v6 = vshll.u32 %v2624_v33, %v1478_v51  ;;  %v1485_v22 = vshrl.u32 %v2625_v35, %v1479_v60  ;;  %v1487_v23 = vshll.u32 %v2625_v35, %v1478_v51  ;;  %v1488_v12 = vshrl.u32 %v2626_v37, %v1479_v60 }
 0x155   : > { %v1490_v26 = vshll.u32 %v2626_v37, %v1478_v51  ;;  %v1491_v13 = vshrl.u32 %v2627_v39, %v1479_v60  ;;  %v1483_v16 = vor.u32 %v1482_v11, %v1481_v14  ;;  %v1493_v32 = vshll.u32 %v2627_v39, %v1478_v51 }
 0x156   : > { %v1486_v28 = vor.u32 %v1485_v22, %v1484_v6  ;;  %v1494_v27 = vshrl.u32 %v2628_v45, %v1479_v60  ;;  %vm1417_vm8 = vc.u32 %v3075_v17, %v3078_v18  ;;  %v1418_v34 = vadd.s32 1, %v3079_v10 }
 0x157   : > { %v1480_v36 = vshrl.u32 %v2623_v31, %v1479_v60  ;;  %v1489_v38 = vor.u32 %v1488_v12, %v1487_v23  ;;  %v1492_v40 = vor.u32 %v1491_v13, %v1490_v26  ;;  %vm1496_vm9 = vcmp.lt.s32.totalorder %v1477_v9, 1  ;;  %v3121_v23 = vpop.f32.mrf.mxu0 }
 0x158   : > { %v1495_v41 = vor.u32 %v1494_v27, %v1493_v32  ;;  %vm1497_vm10 = vcmp.lt.s32.totalorder %v1477_v9, 2  ;;  %v1419_v42 = vsel %vm1417_vm8, %v1418_v34, %v3079_v10  ;;  %vm1498_vm11 = vcmp.lt.s32.totalorder %v1477_v9, 3 }
 0x159   : > { %vm1499_vm12 = vcmp.lt.s32.totalorder %v1477_v9, 4  ;;  %v1504_v43 = vsel %vm1496_vm9, %v1483_v16, %v1486_v28  ;;  %v1420_v20 = vadd.s32 %v1419_v42, %v1415_v19  ;;  %v1508_v25 = vsel %vm1496_vm9, %v1486_v28, %v1489_v38 }
 0x15a   : > { %v1501_v0 = vsel %vm1499_vm12, %v1489_v38, 2102212464  ;;  %v1505_v46 = vsel %vm1499_vm12, %v1492_v40, 920167782  ;;  %v1500_v47 = vsel %vm1496_vm9, %v1480_v36, %v1483_v16  ;;  %v1509_v49 = vsel %vm1499_vm12, %v1495_v41, 1326507024  ;;  %v3137_v36 = vpop.f32.mrf.mxu0 }
 0x15b   : > { %v1506_v48 = vsel %vm1498_vm11, %v1489_v38, %v1505_v46  ;;  %v1421_v50 = vadd.s32 536870912, %v1420_v20  ;;  %v1502_v51 = vsel %vm1498_vm11, %v1486_v28, %v1501_v0  ;;  %v1510_v53 = vsel %vm1498_vm11, %v1492_v40, %v1509_v49 }
 0x15c   : > { %v1507_v52 = vsel %vm1497_vm10, %v1504_v43, %v1506_v48  ;;  %v1511_v54 = vsel %vm1497_vm10, %v1508_v25, %v1510_v53  ;;  %v1788_v1 = vsel %vm1787_vm13, %v1786_v3, 0  ;;  %v707_v7 = vadd.f32 %v706_v44, %v3041_v24 }
 0x15d   : > { %v3100_v55 = vmul.u32.u64.low %v3045_v29, %v1507_v52  ;;  %v3101_v56 = vmul.u32.u64.high %v3045_v29, %v1507_v52, %v3100_v55  ;;  %v1422_v58 = vshrl.u32 %v1421_v50, 30  ;;  %v1503_v8 = vsel %vm1497_vm10, %v1500_v47, %v1502_v51  ;;  %v884_v52 = vpop.f32.mrf.mxu0 }
 0x15e   : > { %v3105_v59 = vmul.u32.u64.low %v3045_v29, %v1511_v54  ;;  %v3106_v60 = vmul.u32.u64.high %v3045_v29, %v1511_v54, %v3105_v59  ;;  %v1790_v14 = vand.u32 31, %v1788_v1  ;;  %v1784_v10 = vor.u32 8388608, %v3049_v30 }
 0x15f   : > { %v1423_v15 = vshll.u32 %v1422_v58, 30  ;;  %v1522_v19 = vadd.s32 1, %v3101_v56  ;;  %v3114_v11 = vadd.f32 %v791_v2, %v707_v7  ;;  %v1519_v22 = vmul.u32 %v3045_v29, %v1503_v8 }
 0x160   : > { %vm1521_vm14 = vc.u32 %v3106_v60, %v3100_v55  ;;  %v1791_v3 = vsub.s32 32, %v1790_v14  ;;  %v3126_v12 = vshll.u32 %v1784_v10, 8  ;;  %v1416_v26 = vadd.s32 %v3078_v18, %v3075_v17 }
 0x161   : > { %v3116_v6 = vsub.s32 %v1420_v20, %v1423_v15  ;;  %v1523_v24 = vsel %vm1521_vm14, %v1522_v19, %v3101_v56  ;;  %v3130_v13 = vshrl.u32 %v1788_v1, 5  ;;  %v1880_v29 = vand.u32 2147483647, %v3114_v11  ;;  %v3145_v20 = vpop.f32.mrf.mxu1  ;;  %v3171_v19 = vpop.f32.mrf.mxu0 }
 0x162   : > { %v1524_v9 = vadd.s32 %v1523_v24, %v1519_v22  ;;  %v1883_v16 = vand.u32 2139095040, %v3114_v11  ;;  %v1794_v27 = vshrl.u32 %v2624_v33, %v1791_v3  ;;  %v1797_v34 = vshrl.u32 %v2625_v35, %v1791_v3 }
 0x163   : > { %v1426_v30 = vsub.s32 0, %v3116_v6  ;;  %v1446_v38 = vsub.s32 4, %v1422_v58  ;;  %v1800_v40 = vshrl.u32 %v2626_v37, %v1791_v3  ;;  %v1802_v17 = vshll.u32 %v2626_v37, %v1790_v14  ;;  %v3161_v8 = vpop.f32.mrf.mxu1 }
 0x164   : > { %v1525_v32 = vadd.s32 536870912, %v1524_v9  ;;  %v1803_v18 = vshrl.u32 %v2627_v39, %v1791_v3  ;;  %v1793_v42 = vshll.u32 %v2623_v31, %v1790_v14  ;;  %v1796_v43 = vshll.u32 %v2624_v33, %v1790_v14 }
 0x165   : > { %v2321_v28 = vmin.u32 %v1426_v30, %v3116_v6  ;;  %v1806_v44 = vshrl.u32 %v2628_v45, %v1791_v3  ;;  %v1799_v46 = vshll.u32 %v2625_v35, %v1790_v14  ;;  %v1884_v47 = vshrl.u32 %v1883_v16, 23 }
 0x166   : > { %v1526_v0 = vshrl.u32 %v1525_v32, 30  ;;  %v1804_v25 = vor.u32 %v1803_v18, %v1802_v17  ;;  %v1795_v49 = vor.u32 %v1794_v27, %v1793_v42  ;;  %v1798_v50 = vor.u32 %v1797_v34, %v1796_v43  ;;  %v3181_v27 = vpop.f32.mrf.mxu1  ;;  %v3192_v42 = vpop.f32.mrf.mxu0 }
 0x167   : > { %v1428_v41 = vclz %v2321_v28  ;;  %v1805_v51 = vshll.u32 %v2627_v39, %v1790_v14  ;;  %v1447_v53 = vsel %vm1362_vm15, %v1446_v38, %v1422_v58  ;;  %v1801_v56 = vor.u32 %v1800_v40, %v1799_v46 }
 0x168   : > { %v1527_v54 = vshll.u32 %v1526_v0, 30  ;;  %vm1811_vm0 = vcmp.lt.s32.totalorder %v3130_v13, 4  ;;  %v1792_v1 = vshrl.u32 %v2623_v31, %v1791_v3  ;;  %vm1808_vm4 = vcmp.lt.s32.totalorder %v3130_v13, 1 }
 0x169   : > { %v2322_v48 = vadd.s32 4294967294, %v1428_v41  ;;  %v1807_v2 = vor.u32 %v1806_v44, %v1805_v51  ;;  %v1817_v7 = vsel %vm1811_vm0, %v1804_v25, 920167782  ;;  %vm1809_vm5 = vcmp.lt.s32.totalorder %v3130_v13, 2 }
 0x16a   : > { %v3164_v14 = vsub.s32 %v1524_v9, %v1527_v54  ;;  %vm1810_vm6 = vcmp.lt.s32.totalorder %v3130_v13, 3  ;;  %v1816_v10 = vsel %vm1808_vm4, %v1795_v49, %v1798_v50  ;;  %v1550_v3 = vsub.s32 4, %v1526_v0 }
 0x16b   : > { %vm2323_vm2 = vcmp.lt.s32.totalorder %v2322_v48, 0  ;;  %v1818_v24 = vsel %vm1810_vm6, %v1801_v56, %v1817_v7  ;;  %v1820_v30 = vsel %vm1808_vm4, %v1798_v50, %v1801_v56  ;;  %v1821_v32 = vsel %vm1811_vm0, %v1807_v2, 1326507024 }
 0x16c   : > { %v1431_v58 = vsel %vm2323_vm2, 0, %v2322_v48  ;;  %v1530_v22 = vsub.s32 0, %v3164_v14  ;;  %v1813_v38 = vsel %vm1811_vm0, %v1801_v56, 2102212464  ;;  %v1819_v40 = vsel %vm1809_vm5, %v1816_v10, %v1818_v24 }
 0x16d   : > { %v1432_v61 = vsub.s32 32, %v1431_v58  ;;  %v1436_v15 = vsub.s32 4294967266, %v1431_v58  ;;  %v1433_v9 = vshll.u32 %v3116_v6, %v1431_v58  ;;  %v1822_v17 = vsel %vm1810_vm6, %v1804_v25, %v1821_v32 }
 0x16e   : > { %v2325_v34 = vmin.u32 %v1530_v22, %v3164_v14  ;;  %v2340_v41 = vadd.s32 4294967169, %v1884_v47  ;;  %vm3196_vm7 = vcmp.le.f32.partialorder %v1464_v5, 0.7853982  ;;  %v1812_v46 = vsel %vm1808_vm4, %v1792_v1, %v1795_v49  ;;  %v993_v5 = vpop.f32.mrf.mxu1 }
 0x16f   : > { %v1434_v16 = vshrl.u32 %v1416_v26, %v1432_v61  ;;  %v1437_v28 = vadd.s32 127, %v1436_v15  ;;  %v1823_v26 = vsel %vm1809_vm5, %v1820_v30, %v1822_v17  ;;  %v3204_v25 = vand.u32 8388607, %v1880_v29  ;;  %v3221_v15 = vpop.f32.mrf.mxu0 }
 0x170   : > { %v1532_v44 = vclz %v2325_v34  ;;  %v1814_v47 = vsel %vm1810_vm6, %v1798_v50, %v1813_v38  ;;  %v3209_v51 = vmul.u32.u64.low %v3126_v12, %v1823_v26  ;;  %v3210_v54 = vmul.u32.u64.high %v3126_v12, %v1823_v26, %v3209_v51 }
 0x171   : > { %v1435_v18 = vor.u32 %v1434_v16, %v1433_v9  ;;  %v1438_v6 = vshll.u32 %v1437_v28, 23  ;;  %v1449_v56 = vsel %vm3154_vm1, 0, %v1447_v53  ;;  %v1551_v61 = vsel %vm1466_vm3, %v1550_v3, %v1526_v0  ;;  %v1086_v13 = vpop.f32.mrf.mxu0 }
 0x172   : > { %v2326_v2 = vadd.s32 4294967294, %v1532_v44  ;;  %v3215_v7 = vmul.u32.u64.low %v3126_v12, %v1819_v40  ;;  %v3216_v49 = vmul.u32.u64.high %v3126_v12, %v1819_v40, %v3215_v7  ;;  %v1890_v50 = vadd.s32 1, %v2340_v41 }
 0x173   : > { %v1439_v48 = vor.u32 4788187, %v1438_v6  ;;  %v1442_v58 = vcvt.s32.f32 %v1435_v18  ;;  %v1520_v10 = vadd.s32 %v3100_v55, %v3106_v60  ;;  %v1815_v53 = vsel %vm1809_vm5, %v1812_v46, %v1814_v47 }
 0x174   : > { %vm2327_vm8 = vcmp.lt.s32.totalorder %v2326_v2, 0  ;;  %v994_v22 = vadd.f32 %v993_v5, %v884_v52  ;;  %v1453_v30 = vadd.s32 3, %v1449_v56  ;;  %vm1833_vm9 = vc.u32 %v3210_v54, %v3215_v7 }
 0x175   : > { %v1440_v1 = vand.u32 2147483647, %v1439_v48  ;;  %v1535_v9 = vsel %vm2327_vm8, 0, %v2326_v2  ;;  %v1553_v0 = vsel %vm3196_vm7, 0, %v1551_v61  ;;  %v1834_v3 = vadd.s32 1, %v3216_v49 }
 0x176   : > { %v1536_v16 = vsub.s32 32, %v1535_v9  ;;  %v1540_v28 = vsub.s32 4294967266, %v1535_v9  ;;  %v1537_v55 = vshll.u32 %v3164_v14, %v1535_v9  ;;  %v1831_v60 = vmul.u32 %v3126_v12, %v1815_v53 }
 0x177   : > { %v1443_v24 = vmul.f32 %v1442_v58, %v1440_v1  ;;  %vm1891_vm10 = vcmp.gt.s32.totalorder %v1890_v50, 0  ;;  %v1835_v38 = vsel %vm1833_vm9, %v1834_v3, %v3216_v49  ;;  %v1557_v18 = vadd.s32 3, %v1553_v0 }
 0x178   : > { %v1538_v52 = vshrl.u32 %v1520_v10, %v1536_v16  ;;  %v1541_v34 = vadd.s32 127, %v1540_v28  ;;  %v1892_v40 = vsel %vm1891_vm10, %v1890_v50, 0  ;;  %v1836_v6 = vadd.s32 %v1835_v38, %v1831_v60  ;;  %v3254_v10 = vpop.f32.mrf.mxu1 }
 0x179   : > { %v1444_v32 = vxor.u32 2147483648, %v1443_v24  ;;  %v1894_v26 = vand.u32 31, %v1892_v40  ;;  %v3240_v12 = vadd.f32 %v1086_v13, %v994_v22  ;;  %v3242_v47 = vand.u32 3, %v1453_v30 }
 0x17a   : > { %v1539_v14 = vor.u32 %v1538_v52, %v1537_v55  ;;  %v1542_v44 = vshll.u32 %v1541_v34, 23  ;;  %v1837_v46 = vadd.s32 536870912, %v1836_v6  ;;  %v985_v5 = vadd.f32 %v3145_v20, %v3108_v62  ;;  %v3267_v52 = vpop.f32.mrf.mxu1 }
 0x17b   : > { %v1445_v17 = vsel %vm1362_vm15, %v1444_v32, %v1443_v24  ;;  %v1895_v48 = vsub.s32 32, %v1894_v26  ;;  %v3246_v56 = vand.u32 3, %v1557_v18  ;;  %v1888_v59 = vor.u32 8388608, %v3204_v25 }
 0x17c   : > { %v1448_v41 = vsel %vm3154_vm1, %v3025_v57, %v1445_v17  ;;  %v1543_v51 = vor.u32 4788187, %v1542_v44  ;;  %v3248_v2 = vshrl.u32 %v1837_v46, 30  ;;  %v1546_v58 = vcvt.s32.f32 %v1539_v14 }
 0x17d   : > { %2462 = vcosq.f32 %v1448_v41  ;;  %v1898_v49 = vshrl.u32 %v2624_v33, %v1895_v48  ;;  %v1901_v61 = vshrl.u32 %v2625_v35, %v1895_v48  ;;  %v1904_v50 = vshrl.u32 %v2626_v37, %v1895_v48 }
 0x17e   : > { %2464 = vsinq.f32 %v1448_v41  ;;  %v1544_v1 = vand.u32 2147483647, %v1543_v51  ;;  %v1839_v53 = vshll.u32 %v3248_v2, 30  ;;  %v1893_v22 = vshrl.u32 %v1892_v40, 5 }
 0x17f   : > { %v1897_v62 = vshll.u32 %v2623_v31, %v1894_v26  ;;  %v1903_v20 = vshll.u32 %v2625_v35, %v1894_v26  ;;  %v1900_v25 = vshll.u32 %v2624_v33, %v1894_v26  ;;  %v1906_v30 = vshll.u32 %v2626_v37, %v1894_v26 }
 0x180   : > { %v1547_v24 = vmul.f32 %v1546_v58, %v1544_v1  ;;  %v1907_v9 = vshrl.u32 %v2627_v39, %v1895_v48  ;;  %v3262_v16 = vsub.s32 %v1836_v6, %v1839_v53  ;;  %v1910_v3 = vshrl.u32 %v2628_v45, %v1895_v48 }
 0x181   : > { %v1899_v28 = vor.u32 %v1898_v49, %v1897_v62  ;;  %v1905_v0 = vor.u32 %v1904_v50, %v1903_v20  ;;  %vm1459_vm11 = vcmp.eq.s32.totalorder %v3242_v47, 2  ;;  %v1902_v55 = vor.u32 %v1901_v61, %v1900_v25 }
 0x182   : > { %v1548_v32 = vxor.u32 2147483648, %v1547_v24  ;;  %v1908_v60 = vor.u32 %v1907_v9, %v1906_v30  ;;  %v1909_v13 = vshll.u32 %v2627_v39, %v1894_v26  ;;  %vm1456_vm12 = vcmp.eq.s32.totalorder %v3242_v47, 0 }
 0x183   : > { %v1842_v34 = vsub.s32 0, %v3262_v16  ;;  %v1896_v38 = vshrl.u32 %v2623_v31, %v1895_v48  ;;  %vm1912_vm13 = vcmp.lt.s32.totalorder %v1893_v22, 1  ;;  %v1077_v40 = vadd.f32 %v3171_v19, %v985_v5  ;;  %v3286_v48 = vpop.f32.mrf.mxu1 }
 0x184   : > { %vm1455_vm14 = vcmp.lt.s32.totalorder %v3242_v47, 2  ;;  %v1549_v17 = vsel %vm1466_vm3, %v1548_v32, %v1547_v24  ;;  %v1911_v18 = vor.u32 %v1910_v3, %v1909_v13  ;;  %vm1914_vm15 = vcmp.lt.s32.totalorder %v1893_v22, 3 }
 0x185   : > { %vm1915_vm0 = vcmp.lt.s32.totalorder %v1893_v22, 4  ;;  %vm1452_vm1 = vweird.f32 %v3025_v57  ;;  %v1552_v6 = vsel %vm3196_vm7, %v3029_v63, %v1549_v17  ;;  %v2337_v26 = vmin.u32 %v1842_v34, %v3262_v16  ;;  %v1175_v3 = vpop.f32.mrf.mxu1  ;;  %v1263_v34 = vpop.f32.mrf.mxu0 }
 0x186   : > { %v1916_v41 = vsel %vm1912_vm13, %v1896_v38, %v1899_v28  ;;  %v1917_v19 = vsel %vm1915_vm0, %v1905_v0, 2102212464  ;;  %2466 = vcosq.f32 %v1552_v6  ;;  %v1920_v44 = vsel %vm1912_vm13, %v1899_v28, %v1902_v55 }
 0x187   : > { %v1918_v14 = vsel %vm1914_vm15, %v1902_v55, %v1917_v19  ;;  %v1921_v46 = vsel %vm1915_vm0, %v1908_v60, 920167782  ;;  %2468 = vsinq.f32 %v1552_v6  ;;  %v1844_v51 = vclz %v2337_v26 }
 0x188   : > { %vm1913_vm2 = vcmp.lt.s32.totalorder %v1893_v22, 2  ;;  %v1924_v43 = vsel %vm1912_vm13, %v1902_v55, %v1905_v0  ;;  %v1922_v1 = vsel %vm1914_vm15, %v1905_v0, %v1921_v46  ;;  %v1925_v58 = vsel %vm1915_vm0, %v1911_v18, 1326507024 }
 0x189   : > { %v1919_v49 = vsel %vm1913_vm2, %v1916_v41, %v1918_v14  ;;  %v1928_v61 = vshll.u32 %v1888_v59, 8  ;;  %v2338_v62 = vadd.s32 4294967294, %v1844_v51  ;;  %v1923_v20 = vsel %vm1913_vm2, %v1920_v44, %v1922_v1  ;;  %v1265_v1 = vpop.f32.mrf.mxu0 }
 0x18a   : > { %v2463_v5 = vpop.eup %2462  ;;  %v1926_v24 = vsel %vm1914_vm15, %v1908_v60, %v1925_v58  ;;  %v987_v22 = vadd.f32 %v3161_v8, %v3121_v23  ;;  %v1165_v60 = vadd.f32 %v3254_v10, %v1077_v40  ;;  %v1832_v17 = vadd.s32 %v3215_v7, %v3210_v54  ;;  %v1348_v23 = vpop.f32.mrf.mxu1 }
 0x18b   : > { %v2465_v50 = vpop.eup %2464  ;;  %v1460_v53 = vxor.u32 2147483648, %v2463_v5  ;;  %v1927_v30 = vsel %vm1913_vm2, %v1924_v43, %v1926_v24  ;;  %v3293_v9 = vmul.u32.u64.low %v1928_v61, %v1923_v20  ;;  %v3294_v28 = vmul.u32.u64.high %v1928_v61, %v1923_v20, %v3293_v9 }
 0x18c   : > { %v1457_v25 = vxor.u32 2147483648, %v2465_v50  ;;  %vm2339_vm3 = vcmp.lt.s32.totalorder %v2338_v62, 0  ;;  %v3299_v32 = vmul.u32.u64.low %v1928_v61, %v1927_v30  ;;  %v3300_v59 = vmul.u32.u64.high %v1928_v61, %v1927_v30, %v3299_v32 }
 0x18d   : > { %v1461_v0 = vsel %vm1459_vm11, %v1460_v53, %v2465_v50  ;;  %v1847_v13 = vsel %vm2339_vm3, 0, %v2338_v62  ;;  %v1935_v19 = vmul.u32 %v1928_v61, %v1919_v49  ;;  %v1938_v14 = vadd.s32 1, %v3294_v28 }
 0x18e   : > { %v1458_v55 = vsel %vm1456_vm12, %v2463_v5, %v1457_v25  ;;  %v1848_v18 = vsub.s32 32, %v1847_v13  ;;  %v1852_v6 = vsub.s32 4294967266, %v1847_v13  ;;  %v1849_v41 = vshll.u32 %v3262_v16, %v1847_v13  ;;  %v1350_v25 = vpop.f32.mrf.mxu1 }
 0x18f   : > { %v1462_v38 = vsel %vm1455_vm14, %v1458_v55, %v1461_v0  ;;  %vm1937_vm4 = vc.u32 %v3300_v59, %v3293_v9  ;;  %v1264_v54 = vadd.f32 %v1263_v34, %v1165_v60  ;;  %v1862_v7 = vsub.s32 4, %v3248_v2 }
 0x190   : > { %v1463_v26 = vsel %vm1452_vm1, nan, %v1462_v38  ;;  %v1850_v8 = vshrl.u32 %v1832_v17, %v1848_v18  ;;  %v1853_v47 = vadd.s32 127, %v1852_v6  ;;  %v1939_v57 = vsel %vm1937_vm4, %v1938_v14, %v3294_v28 }
 0x191   : > { %2192 = vst [vmem:[%s3315_s23] sm:$0xff] %v1463_v26  ;;  %v1079_v10 = vadd.f32 %v3192_v42, %v987_v22  ;;  %v3324_v16 = vadd.f32 %v1175_v3, %v3240_v12  ;;  %v1940_v46 = vadd.s32 %v1939_v57, %v1935_v19  ;;  %v3326_v51 = vadd.f32 %v1348_v23, %v1264_v54 }
 0x192   : > { %v1851_v40 = vor.u32 %v1850_v8, %v1849_v41  ;;  %v1854_v44 = vshll.u32 %v1853_v47, 23  ;;  %vm1556_vm5 = vweird.f32 %v3029_v63  ;;  %vm3331_vm6 = vcmp.le.f32.partialorder %v1776_v21, 0.7853982 }
 0x193   : > { %vm1778_vm7 = vcmp.lt.s32.totalorder %v3033_v4, 0  ;;  %v1167_v42 = vadd.f32 %v3267_v52, %v1079_v10  ;;  %v2467_v5 = vpop.eup %2466  ;;  %vm1559_vm8 = vcmp.lt.s32.totalorder %v3246_v56, 2  ;;  %vm1563_vm9 = vcmp.eq.s32.totalorder %v3246_v56, 2 }
 0x194   : > { %v1855_v12 = vor.u32 4788187, %v1854_v44  ;;  %v1941_v49 = vadd.s32 536870912, %v1940_v46  ;;  %v2469_v58 = vpop.eup %2468  ;;  %v1564_v61 = vxor.u32 2147483648, %v2467_v5  ;;  %v1863_v21 = vsel %vm1778_vm7, %v1862_v7, %v3248_v2 }
 0x195   : > { %v1568_v50 = vand.u32 2147483647, %v3326_v51  ;;  %v1571_v53 = vand.u32 2139095040, %v3326_v51  ;;  %v1561_v62 = vxor.u32 2147483648, %v2469_v58  ;;  %v1858_v20 = vcvt.s32.f32 %v1851_v40 }
 0x196   : > { %v1856_v52 = vand.u32 2147483647, %v1855_v12  ;;  %v3344_v24 = vshrl.u32 %v1941_v49, 30  ;;  %vm1560_vm10 = vcmp.eq.s32.totalorder %v3246_v56, 0  ;;  %v1565_v30 = vsel %vm1563_vm9, %v1564_v61, %v2469_v58 }
 0x197   : > { %v1266_v28 = vadd.f32 %v1265_v1, %v1167_v42  ;;  %v1572_v3 = vshrl.u32 %v1571_v53, 23  ;;  %v1562_v0 = vsel %vm1560_vm10, %v2467_v5, %v1561_v62  ;;  %v1865_v2 = vsel %vm3331_vm6, 0, %v1863_v21 }
 0x198   : > { %v1859_v32 = vmul.f32 %v1858_v20, %v1856_v52  ;;  %v1943_v55 = vshll.u32 %v3344_v24, 30  ;;  %v1566_v13 = vsel %vm1559_vm8, %v1562_v0, %v1565_v30  ;;  %v1575_v60 = vand.u32 8388607, %v1568_v50 }
 0x199   : > { %v2328_v22 = vadd.s32 4294967169, %v1572_v3  ;;  %v3354_v34 = vadd.f32 %v1350_v25, %v1266_v28  ;;  %v1567_v38 = vsel %vm1556_vm5, nan, %v1566_v13  ;;  %v1869_v6 = vadd.s32 3, %v1865_v2 }
 0x19a   : > { %v1860_v17 = vxor.u32 2147483648, %v1859_v32  ;;  %v3358_v18 = vsub.s32 %v1940_v46, %v1943_v55  ;;  %2193 = vst [vmem:[%s3315_s23 + $0x8] sm:$0xff] %v1567_v38  ;;  %v992_v26 = vadd.f32 %v3181_v27, %v3137_v36  ;;  %v1576_v63 = vor.u32 8388608, %v1575_v60 }
 0x19b   : > { %v1578_v41 = vadd.s32 1, %v2328_v22  ;;  %v1675_v23 = vand.u32 2139095040, %v3354_v34  ;;  %v3371_v36 = vand.u32 3, %v1869_v6  ;;  %v1936_v7 = vadd.s32 %v3293_v9, %v3300_v59 }
 0x19c   : > { %v1861_v56 = vsel %vm1778_vm7, %v1860_v17, %v1859_v32  ;;  %v1946_v19 = vsub.s32 0, %v3358_v18  ;;  %v3374_v27 = vadd.f32 %v3221_v15, %v992_v26  ;;  %v1966_v10 = vsub.s32 4, %v3344_v24 }
 0x19d   : > { %v1864_v14 = vsel %vm3331_vm6, %v3033_v4, %v1861_v56  ;;  %vm1579_vm11 = vcmp.gt.s32.totalorder %v1578_v41, 0  ;;  %v1672_v40 = vand.u32 2147483647, %v3354_v34  ;;  %v3382_v43 = vshll.u32 %v1576_v63, 8 }
 0x19e   : > { %2470 = vcosq.f32 %v1864_v14  ;;  %v2341_v8 = vmin.u32 %v1946_v19, %v3358_v18  ;;  %v1580_v47 = vsel %vm1579_vm11, %v1578_v41, 0  ;;  %v1676_v42 = vshrl.u32 %v1675_v23, 23 }
 0x19f   : > { %2472 = vsinq.f32 %v1864_v14  ;;  %v1582_v54 = vand.u32 31, %v1580_v47  ;;  %v3380_v44 = vshrl.u32 %v1580_v47, 5  ;;  %vm1875_vm13 = vcmp.eq.s32.totalorder %v3371_v36, 2 }
 0x1a0   : > { %v1948_v57 = vclz %v2341_v8  ;;  %vm1872_vm14 = vcmp.eq.s32.totalorder %v3371_v36, 0  ;;  %vm1868_vm1 = vweird.f32 %v3033_v4  ;;  %vm1882_vm2 = vcmp.lt.s32.totalorder %v3114_v11, 0 }
 0x1a1   : > { %v1583_v46 = vsub.s32 32, %v1582_v54  ;;  %v1585_v12 = vshll.u32 %v2623_v31, %v1582_v54  ;;  %v1588_v15 = vshll.u32 %v2624_v33, %v1582_v54  ;;  %v1591_v49 = vshll.u32 %v2625_v35, %v1582_v54 }
 0x1a2   : > { %v2342_v5 = vadd.s32 4294967294, %v1948_v57  ;;  %v1594_v58 = vshll.u32 %v2626_v37, %v1582_v54  ;;  %v1597_v21 = vshll.u32 %v2627_v39, %v1582_v54  ;;  %vm1600_vm15 = vcmp.lt.s32.totalorder %v3380_v44, 1 }
 0x1a3   : > { %v1586_v9 = vshrl.u32 %v2624_v33, %v1583_v46  ;;  %v1589_v59 = vshrl.u32 %v2625_v35, %v1583_v46  ;;  %v1592_v1 = vshrl.u32 %v2626_v37, %v1583_v46  ;;  %v1595_v61 = vshrl.u32 %v2627_v39, %v1583_v46 }
 0x1a4   : > { %vm2343_vm12 = vcmp.lt.s32.totalorder %v2342_v5, 0  ;;  %v1598_v53 = vshrl.u32 %v2628_v45, %v1583_v46  ;;  %v1584_v32 = vshrl.u32 %v2623_v31, %v1583_v46  ;;  %vm1602_vm0 = vcmp.lt.s32.totalorder %v3380_v44, 3 }
 0x1a5   : > { %v1951_v62 = vsel %vm2343_vm12, 0, %v2342_v5  ;;  %v1587_v52 = vor.u32 %v1586_v9, %v1585_v12  ;;  %v1590_v20 = vor.u32 %v1589_v59, %v1588_v15  ;;  %v1593_v25 = vor.u32 %v1592_v1, %v1591_v49 }
 0x1a6   : > { %v1952_v30 = vsub.s32 32, %v1951_v62  ;;  %v1956_v28 = vsub.s32 4294967266, %v1951_v62  ;;  %v1596_v3 = vor.u32 %v1595_v61, %v1594_v58  ;;  %v1953_v0 = vshll.u32 %v3358_v18, %v1951_v62  ;;  %v1270_v62 = vpop.f32.mrf.mxu0 }
 0x1a7   : > { %v1599_v2 = vor.u32 %v1598_v53, %v1597_v21  ;;  %vm1603_vm3 = vcmp.lt.s32.totalorder %v3380_v44, 4  ;;  %v1608_v22 = vsel %vm1600_vm15, %v1587_v52, %v1590_v20  ;;  %v1612_v17 = vsel %vm1600_vm15, %v1590_v20, %v1593_v25 }
 0x1a8   : > { %v1954_v55 = vshrl.u32 %v1936_v7, %v1952_v30  ;;  %v1957_v13 = vadd.s32 127, %v1956_v28  ;;  %v1605_v60 = vsel %vm1603_vm3, %v1593_v25, 2102212464  ;;  %v1609_v38 = vsel %vm1603_vm3, %v1596_v3, 920167782  ;;  %v1355_v30 = vpop.f32.mrf.mxu1 }
 0x1a9   : > { %v1613_v18 = vsel %vm1603_vm3, %v1599_v2, 1326507024  ;;  %vm1601_vm4 = vcmp.lt.s32.totalorder %v3380_v44, 2  ;;  %v1610_v41 = vsel %vm1602_vm0, %v1593_v25, %v1609_v38  ;;  %v1604_v19 = vsel %vm1600_vm15, %v1584_v32, %v1587_v52 }
 0x1aa   : > { %v1955_v6 = vor.u32 %v1954_v55, %v1953_v0  ;;  %v1958_v26 = vshll.u32 %v1957_v13, 23  ;;  %v1611_v14 = vsel %vm1601_vm4, %v1608_v22, %v1610_v41  ;;  %v1614_v63 = vsel %vm1602_vm0, %v1596_v3, %v1613_v18 }
 0x1ab   : > { %v2471_v56 = vpop.eup %2470  ;;  %v2332_v23 = vadd.s32 4294967169, %v1676_v42  ;;  %v1606_v7 = vsel %vm1602_vm0, %v1590_v20, %v1605_v60  ;;  %v1615_v57 = vsel %vm1601_vm4, %v1612_v17, %v1614_v63  ;;  %vm1871_vm5 = vcmp.lt.s32.totalorder %v3371_v36, 2 }
 0x1ac   : > { %v2473_v8 = vpop.eup %2472  ;;  %v1876_v47 = vxor.u32 2147483648, %v2471_v56  ;;  %v1959_v54 = vor.u32 4788187, %v1958_v26  ;;  %v1962_v5 = vcvt.s32.f32 %v1955_v6  ;;  %v1174_v58 = vadd.f32 %v3286_v48, %v3374_v27 }
 0x1ad   : > { %v1873_v46 = vxor.u32 2147483648, %v2473_v8  ;;  %v3421_v12 = vmul.u32.u64.low %v3382_v43, %v1615_v57  ;;  %v3422_v15 = vmul.u32.u64.high %v3382_v43, %v1615_v57, %v3421_v12  ;;  %v1682_v61 = vadd.s32 1, %v2332_v23 }
 0x1ae   : > { %v1877_v49 = vsel %vm1875_vm13, %v1876_v47, %v2473_v8  ;;  %v1960_v42 = vand.u32 2147483647, %v1959_v54  ;;  %v3427_v9 = vmul.u32.u64.low %v3382_v43, %v1611_v14  ;;  %v3428_v59 = vmul.u32.u64.high %v3382_v43, %v1611_v14, %v3427_v9 }
 0x1af   : > { %v1874_v1 = vsel %vm1872_vm14, %v2471_v56, %v1873_v46  ;;  %v1607_v52 = vsel %vm1601_vm4, %v1604_v19, %v1606_v7  ;;  %v1679_v20 = vand.u32 8388607, %v1672_v40  ;;  %v1967_v36 = vsel %vm1882_vm2, %v1966_v10, %v3344_v24 }
 0x1b0   : > { %v1878_v21 = vsel %vm1871_vm5, %v1874_v1, %v1877_v49  ;;  %v1963_v53 = vmul.f32 %v1962_v5, %v1960_v42  ;;  %vm1625_vm6 = vc.u32 %v3422_v15, %v3427_v9  ;;  %vm1683_vm7 = vcmp.gt.s32.totalorder %v1682_v61, 0 }
 0x1b1   : > { %v1879_v25 = vsel %vm1868_vm1, nan, %v1878_v21  ;;  %v1626_v27 = vadd.s32 1, %v3428_v59  ;;  %v1684_v44 = vsel %vm1683_vm7, %v1682_v61, 0  ;;  %vm3453_vm8 = vcmp.le.f32.partialorder %v1880_v29, 0.7853982 }
 0x1b2   : > { %2196 = vst [vmem:[%s3315_s23 + $0x20] sm:$0xff] %v1879_v25  ;;  %v1964_v48 = vxor.u32 2147483648, %v1963_v53  ;;  %v1271_v28 = vadd.f32 %v1270_v62, %v1174_v58  ;;  %v1623_v3 = vmul.u32 %v3382_v43, %v1607_v52  ;;  %v1686_v24 = vand.u32 31, %v1684_v44 }
 0x1b3   : > { %v1969_v0 = vsel %vm3453_vm8, 0, %v1967_v36  ;;  %v1627_v32 = vsel %vm1625_vm6, %v1626_v27, %v3428_v59  ;;  %v1680_v2 = vor.u32 8388608, %v1679_v20  ;;  %v1685_v43 = vshrl.u32 %v1684_v44, 5  ;;  %v1272_v20 = vpop.f32.mrf.mxu0 }
 0x1b4   : > { %v1965_v10 = vsel %vm1882_vm2, %v1964_v48, %v1963_v53  ;;  %v1628_v55 = vadd.s32 %v1627_v32, %v1623_v3  ;;  %v1687_v13 = vsub.s32 32, %v1686_v24  ;;  %v3466_v22 = vadd.f32 %v1355_v30, %v1271_v28 }
 0x1b5   : > { %v1968_v29 = vsel %vm3453_vm8, %v3114_v11, %v1965_v10  ;;  %v1689_v60 = vshll.u32 %v2623_v31, %v1686_v24  ;;  %v1692_v38 = vshll.u32 %v2624_v33, %v1686_v24  ;;  %v1695_v6 = vshll.u32 %v2625_v35, %v1686_v24 }
 0x1b6   : > { %2474 = vcosq.f32 %v1968_v29  ;;  %v1629_v17 = vadd.s32 536870912, %v1628_v55  ;;  %v1690_v18 = vshrl.u32 %v2624_v33, %v1687_v13  ;;  %v1693_v26 = vshrl.u32 %v2625_v35, %v1687_v13 }
 0x1b7   : > { %2476 = vsinq.f32 %v1968_v29  ;;  %v1696_v41 = vshrl.u32 %v2626_v37, %v1687_v13  ;;  %v1698_v56 = vshll.u32 %v2626_v37, %v1686_v24  ;;  %v1699_v19 = vshrl.u32 %v2627_v39, %v1687_v13 }
 0x1b8   : > { %v3476_v14 = vshrl.u32 %v1629_v17, 30  ;;  %v1691_v63 = vor.u32 %v1690_v18, %v1689_v60  ;;  %v1701_v23 = vshll.u32 %v2627_v39, %v1686_v24  ;;  %v1702_v8 = vshrl.u32 %v2628_v45, %v1687_v13 }
 0x1b9   : > { %v1973_v47 = vadd.s32 3, %v1969_v0  ;;  %v1694_v54 = vor.u32 %v1693_v26, %v1692_v38  ;;  %v1697_v7 = vor.u32 %v1696_v41, %v1695_v6  ;;  %v1700_v57 = vor.u32 %v1699_v19, %v1698_v56  ;;  %v1357_v6 = vpop.f32.mrf.mxu1 }
 0x1ba   : > { %v1631_v46 = vshll.u32 %v3476_v14, 30  ;;  %v1703_v5 = vor.u32 %v1702_v8, %v1701_v23  ;;  %vm1704_vm9 = vcmp.lt.s32.totalorder %v1685_v43, 1  ;;  %v1720_v12 = vshll.u32 %v1680_v2, 8 }
 0x1bb   : > { %v1688_v49 = vshrl.u32 %v2623_v31, %v1687_v13  ;;  %vm1707_vm10 = vcmp.lt.s32.totalorder %v1685_v43, 4  ;;  %v1712_v42 = vsel %vm1704_vm9, %v1691_v63, %v1694_v54  ;;  %v1987_v59 = vand.u32 2139095040, %v3466_v22 }
 0x1bc   : > { %v3484_v1 = vsub.s32 %v1628_v55, %v1631_v46  ;;  %vm1706_vm11 = vcmp.lt.s32.totalorder %v1685_v43, 3  ;;  %v1709_v58 = vsel %vm1707_vm10, %v1697_v7, 2102212464  ;;  %v1713_v61 = vsel %vm1707_vm10, %v1700_v57, 920167782 }
 0x1bd   : > { %vm1705_vm12 = vcmp.lt.s32.totalorder %v1685_v43, 2  ;;  %v1714_v21 = vsel %vm1706_vm11, %v1697_v7, %v1713_v61  ;;  %v1716_v53 = vsel %vm1704_vm9, %v1694_v54, %v1697_v7  ;;  %v1717_v62 = vsel %vm1707_vm10, %v1703_v5, 1326507024 }
 0x1be   : > { %v1974_v52 = vand.u32 3, %v1973_v47  ;;  %v1634_v25 = vsub.s32 0, %v3484_v1  ;;  %v1708_v36 = vsel %vm1704_vm9, %v1688_v49, %v1691_v63  ;;  %v1715_v48 = vsel %vm1705_vm12, %v1712_v42, %v1714_v21 }
 0x1bf   : > { %vm1972_vm13 = vweird.f32 %v3114_v11  ;;  %v1710_v27 = vsel %vm1706_vm11, %v1694_v54, %v1709_v58  ;;  %v1718_v44 = vsel %vm1706_vm11, %v1700_v57, %v1717_v62  ;;  %v1984_v24 = vand.u32 2147483647, %v3466_v22 }
 0x1c0   : > { %v3491_v30 = vmul.u32.u64.low %v1720_v12, %v1715_v48  ;;  %v3492_v4 = vmul.u32.u64.high %v1720_v12, %v1715_v48, %v3491_v30  ;;  %v2329_v28 = vmin.u32 %v1634_v25, %v3484_v1  ;;  %v1719_v3 = vsel %vm1705_vm12, %v1716_v53, %v1718_v44 }
 0x1c1   : > { %v1988_v10 = vshrl.u32 %v1987_v59, 23  ;;  %v1273_v0 = vadd.f32 %v1272_v20, %v3324_v16  ;;  %vm1570_vm14 = vcmp.lt.s32.totalorder %v3326_v51, 0  ;;  %vm1975_vm15 = vcmp.lt.s32.totalorder %v1974_v52, 2 }
 0x1c2   : > { %v3500_v32 = vmul.u32.u64.low %v1720_v12, %v1719_v3  ;;  %v3501_v2 = vmul.u32.u64.high %v1720_v12, %v1719_v3, %v3500_v32  ;;  %vm1976_vm0 = vcmp.eq.s32.totalorder %v1974_v52, 0  ;;  %v1636_v55 = vclz %v2329_v28 }
 0x1c3   : > { %v2475_v29 = vpop.eup %2474  ;;  %v1711_v13 = vsel %vm1705_vm12, %v1708_v36, %v1710_v27  ;;  %vm1979_vm1 = vcmp.eq.s32.totalorder %v1974_v52, 2  ;;  %v1730_v17 = vadd.s32 1, %v3492_v4  ;;  %v2344_v18 = vadd.s32 4294967169, %v1988_v10 }
 0x1c4   : > { %v2477_v60 = vpop.eup %2476  ;;  %v1980_v38 = vxor.u32 2147483648, %v2475_v29  ;;  %v2330_v16 = vadd.s32 4294967294, %v1636_v55  ;;  %v1654_v41 = vsub.s32 4, %v3476_v14  ;;  %v1991_v56 = vand.u32 8388607, %v1984_v24 }
 0x1c5   : > { %v1977_v26 = vxor.u32 2147483648, %v2477_v60  ;;  %v1727_v63 = vmul.u32 %v1720_v12, %v1711_v13  ;;  %vm1729_vm2 = vc.u32 %v3501_v2, %v3491_v30  ;;  %v1994_v43 = vadd.s32 1, %v2344_v18 }
 0x1c6   : > { %v1981_v19 = vsel %vm1979_vm1, %v1980_v38, %v2477_v60  ;;  %vm2331_vm3 = vcmp.lt.s32.totalorder %v2330_v16, 0  ;;  %v1731_v8 = vsel %vm1729_vm2, %v1730_v17, %v3492_v4  ;;  %v3512_v47 = vadd.f32 %v1357_v6, %v1273_v0 }
 0x1c7   : > { %v1978_v23 = vsel %vm1976_vm0, %v2475_v29, %v1977_v26  ;;  %v1639_v7 = vsel %vm2331_vm3, 0, %v2330_v16  ;;  %v1732_v57 = vadd.s32 %v1731_v8, %v1727_v63  ;;  %vm1995_vm4 = vcmp.gt.s32.totalorder %v1994_v43, 0 }
 0x1c8   : > { %v1982_v54 = vsel %vm1975_vm15, %v1978_v23, %v1981_v19  ;;  %v1624_v5 = vadd.s32 %v3427_v9, %v3422_v15  ;;  %v1640_v12 = vsub.s32 32, %v1639_v7  ;;  %v1644_v49 = vsub.s32 4294967266, %v1639_v7 }
 0x1c9   : > { %v1983_v46 = vsel %vm1972_vm13, nan, %v1982_v54  ;;  %v3523_v42 = vsel %vm1570_vm14, %v1654_v41, %v3476_v14  ;;  %v1733_v59 = vadd.s32 536870912, %v1732_v57  ;;  %v1992_v58 = vor.u32 8388608, %v1991_v56 }
 0x1ca   : > { %2197 = vst [vmem:[%s3315_s23 + $0x28] sm:$0xff] %v1983_v46  ;;  %v1996_v61 = vsel %vm1995_vm4, %v1994_v43, 0  ;;  %v1641_v21 = vshll.u32 %v3484_v1, %v1639_v7  ;;  %v1642_v53 = vshrl.u32 %v1624_v5, %v1640_v12  ;;  %v1645_v62 = vadd.s32 127, %v1644_v49 }
 0x1cb   : > { %v1998_v11 = vand.u32 31, %v1996_v61  ;;  %v3526_v52 = vshrl.u32 %v1733_v59, 30  ;;  %vm3530_vm5 = vcmp.le.f32.partialorder %v1568_v50, 0.7853982  ;;  %v3539_v27 = vshll.u32 %v1992_v58, 8 }
 0x1cc   : > { %v1643_v9 = vor.u32 %v1642_v53, %v1641_v21  ;;  %v1646_v20 = vshll.u32 %v1645_v62, 23  ;;  %v1657_v25 = vsel %vm3530_vm5, 0, %v3523_v42  ;;  %v2091_v44 = vand.u32 2139095040, %v3512_v47 }
 0x1cd   : > { %v1999_v14 = vsub.s32 32, %v1998_v11  ;;  %v1735_v1 = vshll.u32 %v3526_v52, 30  ;;  %v1997_v4 = vshrl.u32 %v1996_v61, 5  ;;  %v2001_v28 = vshll.u32 %v2623_v31, %v1998_v11 }
 0x1ce   : > { %v1647_v36 = vor.u32 4788187, %v1646_v20  ;;  %v1650_v0 = vcvt.s32.f32 %v1643_v9  ;;  %v2004_v32 = vshll.u32 %v2624_v33, %v1998_v11  ;;  %v2007_v60 = vshll.u32 %v2625_v35, %v1998_v11 }
 0x1cf   : > { %v2002_v48 = vshrl.u32 %v2624_v33, %v1999_v14  ;;  %v3542_v50 = vsub.s32 %v1732_v57, %v1735_v1  ;;  %v2005_v3 = vshrl.u32 %v2625_v35, %v1999_v14  ;;  %v2008_v29 = vshrl.u32 %v2626_v37, %v1999_v14 }
 0x1d0   : > { %v1648_v10 = vand.u32 2147483647, %v1647_v36  ;;  %v2010_v38 = vshll.u32 %v2626_v37, %v1998_v11  ;;  %v2011_v6 = vshrl.u32 %v2627_v39, %v1999_v14  ;;  %v2014_v26 = vshrl.u32 %v2628_v45, %v1999_v14 }
 0x1d1   : > { %v1738_v55 = vsub.s32 0, %v3542_v50  ;;  %v2003_v13 = vor.u32 %v2002_v48, %v2001_v28  ;;  %v2006_v18 = vor.u32 %v2005_v3, %v2004_v32  ;;  %v1728_v16 = vadd.s32 %v3491_v30, %v3501_v2 }
 0x1d2   : > { %v1651_v17 = vmul.f32 %v1650_v0, %v1648_v10  ;;  %v1758_v56 = vsub.s32 4, %v3526_v52  ;;  %v2092_v19 = vshrl.u32 %v2091_v44, 23  ;;  %v2009_v43 = vor.u32 %v2008_v29, %v2007_v60 }
 0x1d3   : > { %v2333_v41 = vmin.u32 %v1738_v55, %v3542_v50  ;;  %v2012_v23 = vor.u32 %v2011_v6, %v2010_v38  ;;  %v2013_v8 = vshll.u32 %v2627_v39, %v1998_v11  ;;  %v2000_v7 = vshrl.u32 %v2623_v31, %v1999_v14 }
 0x1d4   : > { %v1652_v63 = vxor.u32 2147483648, %v1651_v17  ;;  %vm2016_vm6 = vcmp.lt.s32.totalorder %v1997_v4, 1  ;;  %vm2017_vm7 = vcmp.lt.s32.totalorder %v1997_v4, 2  ;;  %vm1674_vm8 = vcmp.lt.s32.totalorder %v3354_v34, 0 }
 0x1d5   : > { %v1740_v54 = vclz %v2333_v41  ;;  %v2015_v30 = vor.u32 %v2014_v26, %v2013_v8  ;;  %vm2019_vm9 = vcmp.lt.s32.totalorder %v1997_v4, 4  ;;  %v2024_v2 = vsel %vm2016_vm6, %v2003_v13, %v2006_v18 }
 0x1d6   : > { %v1653_v57 = vsel %vm1570_vm14, %v1652_v63, %v1651_v17  ;;  %vm2018_vm10 = vcmp.lt.s32.totalorder %v1997_v4, 3  ;;  %v2025_v12 = vsel %vm2019_vm9, %v2012_v23, 920167782  ;;  %v2020_v49 = vsel %vm2016_vm6, %v2000_v7, %v2003_v13 }
 0x1d7   : > { %v1656_v46 = vsel %vm3530_vm5, %v3326_v51, %v1653_v57  ;;  %v2334_v5 = vadd.s32 4294967294, %v1740_v54  ;;  %v2021_v42 = vsel %vm2019_vm9, %v2009_v43, 2102212464  ;;  %v2026_v59 = vsel %vm2018_vm10, %v2009_v43, %v2025_v12 }
 0x1d8   : > { %2478 = vcosq.f32 %v1656_v46  ;;  %v2027_v58 = vsel %vm2017_vm7, %v2024_v2, %v2026_v59  ;;  %v2028_v61 = vsel %vm2016_vm6, %v2006_v18, %v2009_v43  ;;  %v2029_v53 = vsel %vm2019_vm9, %v2015_v30, 1326507024 }
 0x1d9   : > { %2480 = vsinq.f32 %v1656_v46  ;;  %vm2335_vm11 = vcmp.lt.s32.totalorder %v2334_v5, 0  ;;  %v3571_v62 = vmul.u32.u64.low %v3539_v27, %v2027_v58  ;;  %v3572_v11 = vmul.u32.u64.high %v3539_v27, %v2027_v58, %v3571_v62 }
 0x1da   : > { %v1743_v21 = vsel %vm2335_vm11, 0, %v2334_v5  ;;  %v2022_v20 = vsel %vm2018_vm10, %v2006_v18, %v2021_v42  ;;  %v2030_v14 = vsel %vm2018_vm10, %v2012_v23, %v2029_v53  ;;  %v1661_v1 = vadd.s32 3, %v1657_v25 }
 0x1db   : > { %v1744_v15 = vsub.s32 32, %v1743_v21  ;;  %v1748_v9 = vsub.s32 4294967266, %v1743_v21  ;;  %v1745_v36 = vshll.u32 %v3542_v50, %v1743_v21  ;;  %v2031_v48 = vsel %vm2017_vm7, %v2028_v61, %v2030_v14 }
 0x1dc   : > { %v2348_v44 = vadd.s32 4294967169, %v2092_v19  ;;  %v3580_v10 = vmul.u32.u64.low %v3539_v27, %v2031_v48  ;;  %v3581_v0 = vmul.u32.u64.high %v3539_v27, %v2031_v48, %v3580_v10  ;;  %v2023_v32 = vsel %vm2017_vm7, %v2020_v49, %v2022_v20 }
 0x1dd   : > { %v1746_v28 = vshrl.u32 %v1728_v16, %v1744_v15  ;;  %v1749_v3 = vadd.s32 127, %v1748_v9  ;;  %v2042_v29 = vadd.s32 1, %v3572_v11  ;;  %v2088_v55 = vand.u32 2147483647, %v3512_v47 }
 0x1de   : > { %v2098_v13 = vadd.s32 1, %v2348_v44  ;;  %v1759_v50 = vsel %vm1674_vm8, %v1758_v56, %v3526_v52  ;;  %v1662_v38 = vand.u32 3, %v1661_v1  ;;  %vm3591_vm13 = vcmp.le.f32.partialorder %v1672_v40, 0.7853982 }
 0x1df   : > { %v1747_v60 = vor.u32 %v1746_v28, %v1745_v36  ;;  %v1750_v25 = vshll.u32 %v1749_v3, 23  ;;  %v2039_v18 = vmul.u32 %v3539_v27, %v2023_v32  ;;  %vm2041_vm14 = vc.u32 %v3581_v0, %v3571_v62 }
 0x1e0   : > { %vm2099_vm12 = vcmp.gt.s32.totalorder %v2098_v13, 0  ;;  %v1761_v6 = vsel %vm3591_vm13, 0, %v1759_v50  ;;  %v2043_v26 = vsel %vm2041_vm14, %v2042_v29, %v3572_v11  ;;  %v2095_v52 = vand.u32 8388607, %v2088_v55 }
 0x1e1   : > { %v1751_v4 = vor.u32 4788187, %v1750_v25  ;;  %v2100_v16 = vsel %vm2099_vm12, %v2098_v13, 0  ;;  %v1754_v40 = vcvt.s32.f32 %v1747_v60  ;;  %v2044_v56 = vadd.s32 %v2043_v26, %v2039_v18 }
 0x1e2   : > { %v2102_v19 = vand.u32 31, %v2100_v16  ;;  %vm1660_vm15 = vweird.f32 %v3326_v51  ;;  %vm1663_vm0 = vcmp.lt.s32.totalorder %v1662_v38, 2  ;;  %vm1664_vm1 = vcmp.eq.s32.totalorder %v1662_v38, 0 }
 0x1e3   : > { %v1752_v41 = vand.u32 2147483647, %v1751_v4  ;;  %v2045_v43 = vadd.s32 536870912, %v2044_v56  ;;  %vm1667_vm2 = vcmp.eq.s32.totalorder %v1662_v38, 2  ;;  %v1765_v7 = vadd.s32 3, %v1761_v6 }
 0x1e4   : > { %v2103_v23 = vsub.s32 32, %v2102_v19  ;;  %v2096_v57 = vor.u32 8388608, %v2095_v52  ;;  %v2101_v5 = vshrl.u32 %v2100_v16, 5  ;;  %v2105_v49 = vshll.u32 %v2623_v31, %v2102_v19 }
 0x1e5   : > { %v2479_v27 = vpop.eup %2478  ;;  %v1755_v63 = vmul.f32 %v1754_v40, %v1752_v41  ;;  %v3604_v46 = vshrl.u32 %v2045_v43, 30  ;;  %v2108_v9 = vshll.u32 %v2624_v33, %v2102_v19  ;;  %v2111_v20 = vshll.u32 %v2625_v35, %v2102_v19 }
 0x1e6   : > { %v2481_v8 = vpop.eup %2480  ;;  %v1668_v54 = vxor.u32 2147483648, %v2479_v27  ;;  %v2106_v42 = vshrl.u32 %v2624_v33, %v2103_v23  ;;  %v2109_v59 = vshrl.u32 %v2625_v35, %v2103_v23  ;;  %v2112_v53 = vshrl.u32 %v2626_v37, %v2103_v23 }
 0x1e7   : > { %v1665_v30 = vxor.u32 2147483648, %v2481_v8  ;;  %v1756_v2 = vxor.u32 2147483648, %v1755_v63  ;;  %v2047_v21 = vshll.u32 %v3604_v46, 30  ;;  %v2114_v36 = vshll.u32 %v2626_v37, %v2102_v19 }
 0x1e8   : > { %v1669_v12 = vsel %vm1667_vm2, %v1668_v54, %v2481_v8  ;;  %v2107_v48 = vor.u32 %v2106_v42, %v2105_v49  ;;  %v2110_v44 = vor.u32 %v2109_v59, %v2108_v9  ;;  %v2115_v28 = vshrl.u32 %v2627_v39, %v2103_v23 }
 0x1e9   : > { %v1666_v58 = vsel %vm1664_vm1, %v2479_v27, %v1665_v30  ;;  %v1757_v61 = vsel %vm1674_vm8, %v1756_v2, %v1755_v63  ;;  %v2048_v1 = vsub.s32 %v2044_v56, %v2047_v21  ;;  %v2113_v10 = vor.u32 %v2112_v53, %v2111_v20 }
 0x1ea   : > { %v1670_v11 = vsel %vm1663_vm0, %v1666_v58, %v1669_v12  ;;  %v1760_v15 = vsel %vm3591_vm13, %v3354_v34, %v1757_v61  ;;  %v2117_v32 = vshll.u32 %v2627_v39, %v2102_v19  ;;  %v2118_v33 = vshrl.u32 %v2628_v45, %v2103_v23 }
 0x1eb   : > { %v1671_v14 = vsel %vm1660_vm15, nan, %v1670_v11  ;;  %2482 = vcosq.f32 %v1760_v15  ;;  %v2050_v3 = vsub.s32 0, %v2048_v1  ;;  %v2116_v35 = vor.u32 %v2115_v28, %v2114_v36 }
 0x1ec   : > { %2194 = vst [vmem:[%s3315_s23 + $0x10] sm:$0xff] %v1671_v14  ;;  %2484 = vsinq.f32 %v1760_v15  ;;  %v2119_v51 = vor.u32 %v2118_v33, %v2117_v32  ;;  %vm2120_vm3 = vcmp.lt.s32.totalorder %v2101_v5, 1  ;;  %vm2123_vm4 = vcmp.lt.s32.totalorder %v2101_v5, 4 }
 0x1ed   : > { %v2345_v29 = vmin.u32 %v2050_v3, %v2048_v1  ;;  %v1766_v13 = vand.u32 3, %v1765_v7  ;;  %v2128_v60 = vsel %vm2120_vm3, %v2107_v48, %v2110_v44  ;;  %v2129_v37 = vsel %vm2123_vm4, %v2116_v35, 920167782 }
 0x1ee   : > { %v2136_v25 = vshll.u32 %v2096_v57, 8  ;;  %v2104_v38 = vshrl.u32 %v2623_v31, %v2103_v23  ;;  %vm2122_vm5 = vcmp.lt.s32.totalorder %v2101_v5, 3  ;;  %v2125_v17 = vsel %vm2123_vm4, %v2113_v10, 2102212464 }
 0x1ef   : > { %v2052_v50 = vclz %v2345_v29  ;;  %vm2121_vm6 = vcmp.lt.s32.totalorder %v2101_v5, 2  ;;  %v2130_v4 = vsel %vm2122_vm5, %v2113_v10, %v2129_v37  ;;  %v2132_v18 = vsel %vm2120_vm3, %v2110_v44, %v2113_v10 }
 0x1f0   : > { %v2133_v39 = vsel %vm2123_vm4, %v2119_v51, 1326507024  ;;  %v2124_v45 = vsel %vm2120_vm3, %v2104_v38, %v2107_v48  ;;  %v2131_v26 = vsel %vm2121_vm6, %v2128_v60, %v2130_v4  ;;  %v2126_v16 = vsel %vm2122_vm5, %v2110_v44, %v2125_v17 }
 0x1f1   : > { %v2346_v6 = vadd.s32 4294967294, %v2052_v50  ;;  %v2134_v52 = vsel %vm2122_vm5, %v2116_v35, %v2133_v39  ;;  %v3630_v40 = vmul.u32.u64.low %v2136_v25, %v2131_v26  ;;  %v3631_v56 = vmul.u32.u64.high %v2136_v25, %v2131_v26, %v3630_v40 }
 0x1f2   : > { %v2135_v41 = vsel %vm2121_vm6, %v2132_v18, %v2134_v52  ;;  %v2040_v63 = vadd.s32 %v3571_v62, %v3581_v0  ;;  %v2127_v8 = vsel %vm2121_vm6, %v2124_v45, %v2126_v16  ;;  %vm1768_vm8 = vcmp.eq.s32.totalorder %v1766_v13, 0 }
 0x1f3   : > { %vm2347_vm7 = vcmp.lt.s32.totalorder %v2346_v6, 0  ;;  %v3633_v19 = vmul.u32.u64.low %v2136_v25, %v2135_v41  ;;  %v3634_v31 = vmul.u32.u64.high %v2136_v25, %v2135_v41, %v3633_v19  ;;  %v2146_v7 = vadd.s32 1, %v3631_v56 }
 0x1f4   : > { %v2055_v27 = vsel %vm2347_vm7, 0, %v2346_v6  ;;  %vm1771_vm9 = vcmp.eq.s32.totalorder %v1766_v13, 2  ;;  %v2143_v59 = vmul.u32 %v2136_v25, %v2127_v8  ;;  %vm1767_vm11 = vcmp.lt.s32.totalorder %v1766_v13, 2 }
 0x1f5   : > { %v2056_v43 = vsub.s32 32, %v2055_v27  ;;  %v2060_v23 = vsub.s32 4294967266, %v2055_v27  ;;  %v2057_v2 = vshll.u32 %v2048_v1, %v2055_v27  ;;  %vm2145_vm10 = vc.u32 %v3634_v31, %v3630_v40 }
 0x1f6   : > { %v2147_v5 = vsel %vm2145_vm10, %v2146_v7, %v3631_v56  ;;  %vm1764_vm12 = vweird.f32 %v3354_v34  ;;  %vm1986_vm13 = vcmp.lt.s32.totalorder %v3466_v22, 0  ;;  %v2070_v28 = vsub.s32 4, %v3604_v46 }
 0x1f7   : > { %v2058_v12 = vshrl.u32 %v2040_v63, %v2056_v43  ;;  %v2061_v49 = vadd.s32 127, %v2060_v23  ;;  %v2148_v21 = vadd.s32 %v2147_v5, %v2143_v59  ;;  %vm1985_vm14 = vcmp.le.f32.partialorder %v1984_v24, 0.7853982 }
 0x1f8   : > { %v2483_v54 = vpop.eup %2482  ;;  %v2071_v33 = vsel %vm1986_vm13, %v2070_v28, %v3604_v46  ;;  %v2144_v25 = vadd.s32 %v3630_v40, %v3634_v31  ;;  %vm2076_vm3 = vweird.f32 %v3466_v22  ;;  %vm2090_vm4 = vcmp.lt.s32.totalorder %v3512_v47, 0 }
 0x1f9   : > { %v2485_v57 = vpop.eup %2484  ;;  %v1772_v30 = vxor.u32 2147483648, %v2483_v54  ;;  %v2059_v0 = vor.u32 %v2058_v12, %v2057_v2  ;;  %v2062_v58 = vshll.u32 %v2061_v49, 23  ;;  %v2149_v9 = vadd.s32 536870912, %v2148_v21 }
 0x1fa   : > { %v1769_v42 = vxor.u32 2147483648, %v2485_v57  ;;  %v2073_v51 = vsel %vm1985_vm14, 0, %v2071_v33  ;;  %vm2089_vm5 = vcmp.le.f32.partialorder %v2088_v55, 0.7853982 }
 0x1fb   : > { %v1773_v62 = vsel %vm1771_vm9, %v1772_v30, %v2485_v57  ;;  %v2063_v11 = vor.u32 4788187, %v2062_v58  ;;  %v2066_v14 = vcvt.s32.f32 %v2059_v0  ;;  %v2150_v1 = vshrl.u32 %v2149_v9, 30 }
 0x1fc   : > { %v1770_v61 = vsel %vm1768_vm8, %v2483_v54, %v1769_v42  ;;  %v2077_v60 = vadd.s32 3, %v2073_v51  ;;  %vm2180_vm9 = vweird.f32 %v3512_v47 }
 0x1fd   : > { %v1774_v53 = vsel %vm1767_vm11, %v1770_v61, %v1773_v62  ;;  %v2064_v20 = vand.u32 2147483647, %v2063_v11  ;;  %v2151_v48 = vshll.u32 %v2150_v1, 30  ;;  %v2174_v23 = vsub.s32 4, %v2150_v1 }
 0x1fe   : > { %v1775_v15 = vsel %vm1764_vm12, nan, %v1774_v53  ;;  %v2078_v24 = vand.u32 3, %v2077_v60 }
 0x1ff   : > { %2195 = vst [vmem:[%s3315_s23 + $0x18] sm:$0xff] %v1775_v15  ;;  %v2067_v36 = vmul.f32 %v2066_v14, %v2064_v20  ;;  %v2152_v3 = vsub.s32 %v2148_v21, %v2151_v48  ;;  %v2175_v7 = vsel %vm2090_vm4, %v2174_v23, %v2150_v1 }
 0x200   : > { %vm2083_vm0 = vcmp.eq.s32.totalorder %v2078_v24, 2  ;;  %vm2080_vm1 = vcmp.eq.s32.totalorder %v2078_v24, 0  ;;  %vm2079_vm2 = vcmp.lt.s32.totalorder %v2078_v24, 2  ;;  %v2177_v57 = vsel %vm2089_vm5, 0, %v2175_v7 }
 0x201   : > { %v2068_v44 = vxor.u32 2147483648, %v2067_v36  ;;  %v2154_v32 = vsub.s32 0, %v2152_v3 }
 0x203   : > { %v2069_v34 = vsel %vm1986_vm13, %v2068_v44, %v2067_v36  ;;  %v2349_v35 = vmin.u32 %v2154_v32, %v2152_v3 }
 0x204   : > { %v2072_v10 = vsel %vm1985_vm14, %v3466_v22, %v2069_v34  ;;  %v2181_v22 = vadd.s32 3, %v2177_v57 }
 0x205   : > { %2486 = vcosq.f32 %v2072_v10  ;;  %v2156_v29 = vclz %v2349_v35 }
 0x206   : > { %2488 = vsinq.f32 %v2072_v10  ;;  %v2182_v30 = vand.u32 3, %v2181_v22 }
 0x207   : > { %v2350_v13 = vadd.s32 4294967294, %v2156_v29 }
 0x208   : > { %vm2187_vm6 = vcmp.eq.s32.totalorder %v2182_v30, 2  ;;  %vm2184_vm7 = vcmp.eq.s32.totalorder %v2182_v30, 0  ;;  %vm2183_vm8 = vcmp.lt.s32.totalorder %v2182_v30, 2 }
 0x209   : > { %vm2351_vm15 = vcmp.lt.s32.totalorder %v2350_v13, 0 }
 0x20a   : > { %v2159_v37 = vsel %vm2351_vm15, 0, %v2350_v13 }
 0x20b   : > { %v2160_v50 = vsub.s32 32, %v2159_v37  ;;  %v2164_v38 = vsub.s32 4294967266, %v2159_v37  ;;  %v2161_v17 = vshll.u32 %v2152_v3, %v2159_v37 }
 0x20d   : > { %v2162_v4 = vshrl.u32 %v2144_v25, %v2160_v50  ;;  %v2165_v18 = vadd.s32 127, %v2164_v38 }
 0x20f   : > { %v2163_v6 = vor.u32 %v2162_v4, %v2161_v17  ;;  %v2166_v45 = vshll.u32 %v2165_v18, 23 }
 0x211   : > { %v2167_v16 = vor.u32 4788187, %v2166_v45  ;;  %v2170_v19 = vcvt.s32.f32 %v2163_v6 }
 0x212   : > { %v2487_v39 = vpop.eup %2486 }
 0x213   : > { %v2489_v46 = vpop.eup %2488  ;;  %v2084_v26 = vxor.u32 2147483648, %v2487_v39  ;;  %v2168_v40 = vand.u32 2147483647, %v2167_v16 }
 0x214   : > { %v2081_v52 = vxor.u32 2147483648, %v2489_v46 }
 0x215   : > { %v2085_v41 = vsel %vm2083_vm0, %v2084_v26, %v2489_v46  ;;  %v2171_v63 = vmul.f32 %v2170_v19, %v2168_v40 }
 0x216   : > { %v2082_v56 = vsel %vm2080_vm1, %v2487_v39, %v2081_v52 }
 0x217   : > { %v2086_v31 = vsel %vm2079_vm2, %v2082_v56, %v2085_v41  ;;  %v2172_v43 = vxor.u32 2147483648, %v2171_v63 }
 0x218   : > { %v2087_v27 = vsel %vm2076_vm3, nan, %v2086_v31 }
 0x219   : > { %2198 = vst [vmem:[%s3315_s23 + $0x30] sm:$0xff] %v2087_v27  ;;  %v2173_v8 = vsel %vm2090_vm4, %v2172_v43, %v2171_v63 }
 0x21a   : > { %v2176_v54 = vsel %vm2089_vm5, %v3512_v47, %v2173_v8 }
 0x21b   : > { %2490 = vcosq.f32 %v2176_v54 }
 0x21c   : > { %2492 = vsinq.f32 %v2176_v54 }
 0x228   : > { %v2491_v2 = vpop.eup %2490 }
 0x229   : > { %v2493_v12 = vpop.eup %2492  ;;  %v2188_v49 = vxor.u32 2147483648, %v2491_v2 }
 0x22a   : > { %v2185_v42 = vxor.u32 2147483648, %v2493_v12 }
 0x22b   : > { %v2189_v59 = vsel %vm2187_vm6, %v2188_v49, %v2493_v12  ;;  %2207 = sbr.rel (!%p3745_p4) target bundleno = 587 (0x24b), region = 40 }
 0x22c   : > { %v2186_v55 = vsel %vm2184_vm7, %v2491_v2, %v2185_v42 }
 0x22d   : > { %v2190_v62 = vsel %vm2183_vm8, %v2186_v55, %v2189_v59 }
 0x22e   : > { %v2191_v0 = vsel %vm2180_vm9, nan, %v2190_v62 }
 0x22f   : > { %2199 = vst [vmem:[%s3315_s23 + $0x38] sm:$0xff] %v2191_v0 }
 0x230   : > { %s3755_s25 = smov (!%p2210_p13, %s2209_s25), 2 }
 0x231   : > { %s3664_s26 = sshll.u32 %s3755_s25, 9 }
 0x232   : > { %s2215_s30 = ssub.s32 1024, %s3664_s26 }
 0x233   : > { %2216 = vsyncadd %s2201_s7, %s2215_s30  ;;  %p2356_p5 = scmp.ne.s32.totalorder %s3664_s26, 0  ;;  %s2366_s21 = sshll.u32 %s2668_s13, 10 }
 0x234   : > { %s3674_s5 = scalar_lea.hbm %s3724_s2, %s2366_s21  ;;  %s2222_s6 = sshll.u32 %s3315_s23, 4  ;;  %s3677_s6 = int_to_ptr.vmem [resolvable:$true] %s2222_s6 }
 0x235   : > { %s2546_s8 = scalar_lea.vmem %s3677_s6, %s3664_s26  ;;  %s2629_s16 = smov [#allocation7]  }
 0x236   : > { %p2547_p1 = scmp.ne.s32.totalorder %s3677_s6, %s2546_s8  ;;  %s2550_s17 = sshll.u32 %s2629_s16, 4  ;;  %s2551_s17 = int_to_ptr.vmem [resolvable:$false] %s2550_s17 }
 0x237   : > { %s2552_s13 = scalar_lea.vmem %s2551_s17, 2048  ;;  %p2553_p3 = scmp.lt.s32.totalorder %s3677_s6, %s2551_s17 }
 0x238   : > { %p2548_p0 = pnand %p2547_p1, %p2356_p5  ;;  %p2554_p8 = scmp.lt.s32.totalorder %s2552_s13, %s2546_s8 }
 0x23a   : > { %p2549_p7 = pneg %p2548_p0  ;;  %p2555_p9 = por %p2554_p8, %p2553_p3 }
 0x23c   : > { %p2556_p6 = pnand %p2555_p9, %p2549_p7 }
 0x23e   : > { %2559 = shalt.err (!%p2556_p6)
}
 0x23f   : > { %s2560_s19 = scalar_lea.hbm %s3674_s5, %s3664_s26  ;;  %s2564_s29 = scalar_lea.hbm %s3724_s2, 1536 }
 0x240   : > { %p2561_p11 = scmp.ne.s32.totalorder %s3674_s5, %s2560_s19  ;;  %p2565_p10 = scmp.lt.s32.totalorder %s3674_s5, %s3724_s2 }
 0x241   : > { %p2566_p4 = scmp.lt.s32.totalorder %s2564_s29, %s2560_s19 }
 0x242   : > { %p2562_p12 = pnand %p2561_p11, %p2356_p5 }
 0x243   : > { %p2567_p13 = por %p2566_p4, %p2565_p10 }
 0x244   : > { %p2563_p2 = pneg %p2562_p12 }
 0x246   : > { %p2568_p1 = pnand %p2567_p13, %p2563_p2 }
 0x248   : > { %2571 = shalt.err (!%p2568_p1)
}
 0x249   : > { %s2630_s14 = smov 512   ;;  %s2631_s25 = smov 32  }
 0x24a   : > { %2228 = dma.vmem_to_hbm [thread:$0]  (%p2356_p5), %s3677_s6, %s3664_s26, %s3674_s5, %s2201_s7, %s2630_s14, %s2630_s14, %s2631_s25  }
 0x24b PF: > { %s2237_s30 = sand.u32 1, %s2602_s9   ;;  %p3746_p0 = scmp.ne.s32.totalorder %s3730_s22, 0 }
 0x24c   : > { %p3747_p7 = scmp.ge.s32.totalorder %s2614_s12, 2  ;;  %s2238_s21 = scalar_lea.sflag [#allocation4], %s2237_s30 }
 0x24e   : > { %p2410_p3 = pnand %p3747_p7, %p3746_p0 }
 0x250   : > { %p2411_p8 = pneg %p2410_p3 }
 0x252   : > { %2597 = dma.done.wait (%p2411_p8), %s2238_s21, 1024  }
 0x253   : > { %2599 = vsyncadd (%p2411_p8), %s2238_s21, 4294966272  ;;  %p16_p9 = scmp.ge.s32.totalorder %s2672_s15, 4   ;;  %s3748_s9 = smov %s2606_s10 }
 0x254   : > { %s3749_s10 = smov %s2610_s11  ;;  %s3750_s11 = smov %s2684_s18 }
 0x255   : > { %s3751_s12 = smov %s2672_s15  ;;  %18 = sbr.rel (!%p16_p9) target bundleno = 6 (0x6), region = 77 }
 0x25a   :  { %2243 = vsyncpa [#allocation3], 1 }
 0x25b   :  { %2245 = vsyncpa [#allocation3 + $0x1], 1 }
 0x25c   :  { %2246 = vsyncpa [#allocation6], 1 }
 0x25d   :  { %2247 = vsyncpa [#allocation4], 1 }
 0x25e   :  { %2249 = vsyncpa [#allocation4 + $0x1], 1 }

</bundles_post_ra>
